<compile_context>
chip_gen: v6e
topology: v6e:2x2x1
jax: 0.10.0
libtpu: 0.0.40
codegen_flags: <defaults>
</compile_context>

<pallas_src>
import math
import numpy as np
import jax
import jax.numpy as jnp
from jax.experimental import pallas as pl
from jax.experimental.pallas import tpu as pltpu

# ----------------------------- module hyper-params ---------------------------
IN_CHANNELS = 3            # x == pos in the reference forward, so in_channels = 3
OUT_CHANNELS = 32
HIDDEN = 32                # hidden width of pos_nn / attn_nn MLPs
FPS_RATIO = 0.5
CLUSTER_RADIUS = 0.25
MAX_NEIGHBORS = 10
K_PAD = 16                 # neighbor slots padded to a multiple of 8
# TODO(synk): if the application can live with max_number_neighbors == 8, set
# K_PAD = 8 and halve the padded-slot work (10 real slots -> 16 padded today).
QPACK = 4                  # queries packed per 128-lane row (4 * 32 channels)
LANES = QPACK * OUT_CHANNELS   # 128
TQ_MAX = 128               # query-blocks per grid step -> 512 queries / 2048 edge rows
MATMUL_DTYPE = jnp.bfloat16    # MXU operand dtype (f32 accumulate); jnp.float32 for exact path


def _round_up(a, b):
    return ((a + b - 1) // b) * b


# ----------------------------- host-side graph glue --------------------------
def fps_numpy(pos, batch, ratio):
    """Farthest point sampling per batch element.
    # TODO(synk): torch_cluster.fps uses a random start point; we start at the
    # first point of each batch for determinism."""
    idx_all = []
    for b in np.unique(batch):
        b_idx = np.where(batch == b)[0]
        p = pos[b_idx]
        n = len(b_idx)
        m = int(math.ceil(ratio * n))
        sel = [0]
        d = np.sum((p - p[0]) ** 2, axis=-1)
        for _ in range(m - 1):
            nxt = int(np.argmax(d))
            sel.append(nxt)
            d = np.minimum(d, np.sum((p - p[nxt]) ** 2, axis=-1))
        idx_all.append(b_idx[np.asarray(sel, dtype=np.int64)])
    return np.concatenate(idx_all)


def radius_dense_numpy(x, y, r, batch_x, batch_y, max_nbrs, k_pad):
    """Dense analogue of torch_cluster.radius: for each query y[q], up to
    `max_nbrs` points of x within radius r and matching batch id, in index order.
    Returns (nbr_idx, mask) of shape (M, k_pad)."""
    M = y.shape[0]
    nbr = np.zeros((M, k_pad), dtype=np.int64)
    mask = np.zeros((M, k_pad), dtype=np.float32)
    for q in range(M):
        cand = np.where(batch_x == batch_y[q])[0]
        d = np.sqrt(np.sum((x[cand] - y[q]) ** 2, axis=-1))
        hits = cand[d <= r][:max_nbrs]
        nbr[q, : len(hits)] = hits
        mask[q, : len(hits)] = 1.0
    return nbr, mask


# --------------------------------- parameters --------------------------------
def init_params(key, c_out=OUT_CHANNELS, hidden=HIDDEN):
    ks = jax.random.split(key, 11)

    def lin(k, fan_in, fan_out):
        bound = 1.0 / math.sqrt(fan_in)
        return jax.random.uniform(k, (fan_in, fan_out), jnp.float32, -bound, bound)

    def bias(k, fan_in, fan_out):
        bound = 1.0 / math.sqrt(fan_in)
        return jax.random.uniform(k, (1, fan_out), jnp.float32, -bound, bound)

    return dict(
        # PointTransformerConv internal linears (bias=False in PyG)
        w_lin=lin(ks[0], IN_CHANNELS, c_out),
        w_src=lin(ks[1], IN_CHANNELS, c_out),
        w_dst=lin(ks[2], IN_CHANNELS, c_out),
        # pos_nn: Linear(3, H) -> ReLU -> Linear(H, C)
        wp1=lin(ks[3], 3, hidden), bp1=bias(ks[4], 3, hidden),
        wp2=lin(ks[5], hidden, c_out), bp2=bias(ks[6], hidden, c_out),
        # attn_nn: Linear(C, H) -> ReLU -> Linear(H, C)
        wa1=lin(ks[7], c_out, hidden), ba1=bias(ks[8], c_out, hidden),
        wa2=lin(ks[9], hidden, c_out), ba2=bias(ks[10], hidden, c_out),
    )


def pack_params(p):
    """Pack the 11 weight/bias arrays into 4 blobs for the 4-query-per-row layout.
    attn_nn layer 1 is folded through the linearity of its input, so the kernel
    only runs three matmuls per edge row:
      (rows,36)@(36,384), (rows,128)@(128,256), (rows,128)@(128,128)."""
    c, h, q = OUT_CHANNELS, HIDDEN, QPACK
    assert h == c, "weight packing assumes hidden == out_channels"
    get = lambda k: np.asarray(p[k], np.float32)
    wp1, bp1 = get("wp1"), get("bp1").reshape(-1)
    wp2, bp2 = get("wp2"), get("bp2").reshape(-1)
    wa1, ba1 = get("wa1"), get("ba1").reshape(-1)
    wa2, ba2 = get("wa2"), get("ba2").reshape(-1)
    w_lin, w_src, w_dst = get("w_lin"), get("w_src"), get("w_dst")

    wd_a1 = w_dst @ wa1            # (3, H)   lin_dst folded into attn_nn layer 1
    ws_a1 = w_src @ wa1            # (3, H)   lin_src folded into attn_nn layer 1
    wp2_a1 = wp2 @ wa1             # (H, H)   pos_nn layer 2 folded into attn_nn layer 1

    L = q * c                      # 128
    # Fused first matmul: per-edge input [rel | pos_j | pos_i] (9 cols) for each of
    # the 4 lane-packed queries.  Output columns: [h_pre | x_j | (alpha_i-alpha_j)@wa1].
    w1 = np.zeros((q * 9, 3 * L), np.float32)
    for g in range(q):
        r = 9 * g
        w1[r:r + 3,     0 * L + g * c: 0 * L + (g + 1) * c] = wp1     # rel   -> pos_nn layer 1
        w1[r + 3:r + 6, 1 * L + g * c: 1 * L + (g + 1) * c] = w_lin   # pos_j -> x_j
        w1[r + 3:r + 6, 2 * L + g * c: 2 * L + (g + 1) * c] = -ws_a1  # pos_j -> -(alpha_j@wa1)
        w1[r + 6:r + 9, 2 * L + g * c: 2 * L + (g + 1) * c] = wd_a1   # pos_i -> +(alpha_i@wa1)
    # Second matmul on h1: [delta | h1@(wp2@wa1)], 4x block-diagonal.
    w2 = np.zeros((L, 2 * L), np.float32)
    for g in range(q):
        w2[g * c:(g + 1) * c, 0 * L + g * c: 0 * L + (g + 1) * c] = wp2
        w2[g * c:(g + 1) * c, 1 * L + g * c: 1 * L + (g + 1) * c] = wp2_a1
    # Third matmul: attn_nn layer 2, 4x block-diagonal (perfect 128x128 MXU tile).
    w3 = np.zeros((L, L), np.float32)
    for g in range(q):
        w3[g * c:(g + 1) * c, g * c:(g + 1) * c] = wa2
    # Biases tiled across the 4 lane groups (kept f32, added post-matmul).
    b = np.stack([np.tile(bp1, q),
                  np.tile(bp2, q),
                  np.tile(bp2 @ wa1 + ba1, q),
                  np.tile(ba2, q)], axis=0)            # (4, 128)
    return (jnp.asarray(w1, MATMUL_DTYPE), jnp.asarray(w2, MATMUL_DTYPE),
            jnp.asarray(w3, MATMUL_DTYPE), jnp.asarray(b, jnp.float32))


# --------------------------------- Pallas kernel ------------------------------
def point_transformer_kernel(x_ref, cnt_ref, w1_ref, w2_ref, w3_ref, b_ref, out_ref):
    tq, lanes = out_ref.shape        # (TQ, 128): 4 queries x 32 channels per row
    rows = x_ref.shape[0]            # TQ * K packed edge rows
    k = rows // tq

    x = x_ref[...]                   # (rows, 36) = 4 x [rel | pos_j | pos_i]

    # Fused first matmul (MXU): pos_nn layer 1 (pre-bias), lin(x_j), and the folded
    # (alpha_i - alpha_j) @ wa1 term -> three lane-dense 128-wide column blocks.
    y1 = jnp.dot(x, w1_ref[...], preferred_element_type=jnp.float32)   # (rows, 384)
    h_pre = y1[:, 0 * lanes:1 * lanes]
    x_j = y1[:, 1 * lanes:2 * lanes]
    attn0 = y1[:, 2 * lanes:3 * lanes]

    b_p1 = b_ref[0:1, :]
    b_p2 = b_ref[1:2, :]
    b_at = b_ref[2:3, :]             # bp2 @ wa1 + ba1
    b_a2 = b_ref[3:4, :]

    # pos_nn: h1 = relu(rel @ wp1 + bp1); one matmul yields [delta | h1@(wp2@wa1)].
    h1 = jnp.maximum(h_pre + b_p1, 0.0)
    y2 = jnp.dot(h1.astype(w2_ref.dtype), w2_ref[...],
                 preferred_element_type=jnp.float32)                   # (rows, 256)
    delta = y2[:, 0 * lanes:1 * lanes] + b_p2

    # attn_nn:  a @ wa1 + ba1  ==  attn0 + h1@(wp2@wa1) + (bp2@wa1 + ba1)
    h2 = jnp.maximum(attn0 + y2[:, 1 * lanes:2 * lanes] + b_at, 0.0)
    a2 = jnp.dot(h2.astype(w3_ref.dtype), w3_ref[...],
                 preferred_element_type=jnp.float32) + b_a2            # (rows, 128)

    v = x_j + delta                  # message value (x_j + delta)

    # Per-target masked softmax over the K neighbor slots (matches
    # torch_geometric.utils.softmax: max-shift, +1e-16 denominator).  K = 16 is a
    # multiple of 8, so the (rows,128) -> (tq,K,128) reshapes are tile-aligned, and
    # the lane dimension (4 queries x 32 channels) stays fully dense throughout.
    a2_3 = a2.reshape(tq, k, lanes)
    v_3 = v.reshape(tq, k, lanes)
    kio = jax.lax.broadcasted_iota(jnp.int32, (tq, k, lanes), 1)
    cnt = cnt_ref[...][:, None, :]                       # (tq, 1, 128) neighbor counts
    am = a2_3 + jnp.where(kio < cnt, jnp.float32(0.0), jnp.float32(-1e30))
    mx = jnp.max(am, axis=1, keepdims=True)
    e = jnp.exp(am - mx)                                 # pad slots underflow to 0 exactly
    den = jnp.sum(e, axis=1, keepdims=True) + 1e-16
    attn = e * pl.reciprocal(den, approx=True)           # EUP, not a VALU divide
    out_ref[...] = jnp.sum(attn * v_3, axis=1)           # aggr = 'add', lane-dense store


def run_point_transformer_conv(x_packed, counts_packed, packed_w, tq):
    """x_packed: (qb_pad*K, 36) packed edge stream, counts_packed: (qb_pad, 128) int32."""
    w1, w2, w3, b = packed_w
    qb_pad = counts_packed.shape[0]
    k = x_packed.shape[0] // qb_pad
    grid = (qb_pad // tq,)

    in_specs = [
        pl.BlockSpec((tq * k, x_packed.shape[1]), lambda i: (i, 0)),
        pl.BlockSpec((tq, LANES), lambda i: (i, 0)),
        pl.BlockSpec(tuple(w1.shape), lambda i: (0, 0)),
        pl.BlockSpec(tuple(w2.shape), lambda i: (0, 0)),
        pl.BlockSpec(tuple(w3.shape), lambda i: (0, 0)),
        pl.BlockSpec(tuple(b.shape), lambda i: (0, 0)),
    ]
    out_specs = pl.BlockSpec((tq, LANES), lambda i: (i, 0))

    return pl.pallas_call(
        point_transformer_kernel,
        out_shape=jax.ShapeDtypeStruct((qb_pad, LANES), jnp.float32),
        grid=grid,
        in_specs=in_specs,
        out_specs=out_specs,
        compiler_params=pltpu.CompilerParams(
            dimension_semantics=("parallel",),
            vmem_limit_bytes=48 * 1024 * 1024),
    )(x_packed, counts_packed, w1, w2, w3, b)


# ------------------------- full module forward (wrapper) ----------------------
def point_transformer_module(pos, batch, params,
                             fps_ratio=FPS_RATIO, r=CLUSTER_RADIUS,
                             max_nbrs=MAX_NEIGHBORS):
    pos_np = np.asarray(pos, dtype=np.float32)
    batch_np = np.asarray(batch)
    n = pos_np.shape[0]
    c = OUT_CHANNELS

    # idx = fps(pos, batch, ratio); row, col = radius(pos, pos[idx], r, batch, batch[idx])
    idx = fps_numpy(pos_np, batch_np, fps_ratio)
    nbr_idx, mask = radius_dense_numpy(pos_np, pos_np[idx], r,
                                       batch_np, batch_np[idx], max_nbrs, K_PAD)
    m = idx.shape[0]
    k = K_PAD

    # Faithful to the reference forward: edge_index = [col, row] is applied to the
    # FULL pos tensor, so the target of query q is pos[q] (the row VALUE q), not
    # pos[idx[q]]; only the radius search itself is centred on pos[idx].
    pos_i_np = pos_np[np.arange(m)]                     # (m, 3)
    pos_j_np = pos_np[nbr_idx]                          # (m, K, 3)
    rel_np = pos_i_np[:, None, :] - pos_j_np            # (m, K, 3)  pos_i - pos_j
    counts = mask.sum(axis=1).astype(np.int32)          # (m,)  >= 1 for every real query

    # ------ pack 4 queries per 128-lane row (lane-dense edge stream & output) ----
    qb_needed = _round_up(m, QPACK) // QPACK
    tq = min(TQ_MAX, _round_up(qb_needed, 8))
    qb_pad = _round_up(qb_needed, tq)
    m_pad = qb_pad * QPACK

    edge9 = np.concatenate(
        [rel_np, pos_j_np, np.broadcast_to(pos_i_np[:, None, :], (m, k, 3))],
        axis=-1).astype(np.float32)                     # (m, K, 9)
    edge9_pad = np.zeros((m_pad, k, 9), np.float32)
    edge9_pad[:m] = edge9
    x_packed = (edge9_pad.reshape(qb_pad, QPACK, k, 9)
                .transpose(0, 2, 1, 3)
                .reshape(qb_pad * k, QPACK * 9))        # (qb_pad*K, 36)

    counts_pad = np.zeros((m_pad,), np.int32)
    counts_pad[:m] = counts
    counts_packed = np.repeat(counts_pad.reshape(qb_pad, QPACK),
                              OUT_CHANNELS, axis=1).astype(np.int32)   # (qb_pad, 128)

    out_packed = run_point_transformer_conv(
        jnp.asarray(x_packed, MATMUL_DTYPE),
        jnp.asarray(counts_packed),
        pack_params(params), tq)

    out_m = out_packed.reshape(qb_pad * QPACK, c)[:m]   # unpack 4 queries per row
    # scatter with aggr='add': nodes that receive no edge stay zero
    out = jnp.zeros((n, c), jnp.float32).at[:m].set(out_m)
    return out, (pos_i_np, pos_j_np, mask, m)


# ------------------------------ pure-JAX reference ----------------------------
def dense_reference(pos_i, pos_j, mask, p):
    rel = pos_i[:, None, :] - pos_j
    h = jax.nn.relu(rel @ p["wp1"] + p["bp1"])
    delta = h @ p["wp2"] + p["bp2"]
    alpha_i = pos_i @ p["w_dst"]
    alpha_j = pos_j @ p["w_src"]
    x_j = pos_j @ p["w_lin"]
    a = alpha_i[:, None, :] - alpha_j + delta
    h2 = jax.nn.relu(a @ p["wa1"] + p["ba1"])
    a2 = h2 @ p["wa2"] + p["ba2"]
    m = mask[:, :, None]
    am = jnp.where(m > 0, a2, -1e30)
    e = jnp.exp(am - am.max(axis=1, keepdims=True)) * m
    attn = e / (e.sum(axis=1, keepdims=True) + 1e-16)
    return (attn * (x_j + delta) * m).sum(axis=1)


if __name__ == "__main__":
    key = jax.random.PRNGKey(0)
    k_pos, k_par = jax.random.split(key)

    N = 16
    pos = jax.random.uniform(k_pos, (N, 3), jnp.float32, 0.0, 0.6)
    batch = jnp.concatenate([jnp.zeros(N // 2, jnp.int32), jnp.ones(N // 2, jnp.int32)])
    params = init_params(k_par)

    out, (pos_i, pos_j, mask, M) = point_transformer_module(pos, batch, params)
    out = jax.block_until_ready(out)

    assert out.shape == (N, OUT_CHANNELS)
    assert bool(jnp.all(jnp.isfinite(out)))

    ref = dense_reference(jnp.asarray(pos_i), jnp.asarray(pos_j), jnp.asarray(mask), params)
    # bf16 MXU operands + approximate-reciprocal softmax denominator -> compare
    # against the f32 reference at bf16-appropriate tolerances.
    np.testing.assert_allclose(np.asarray(out[:M]), np.asarray(ref), rtol=2e-2, atol=1e-2)
    np.testing.assert_allclose(np.asarray(out[M:]), 0.0, atol=0.0)

    print("KERNEL_OK")
</pallas_src>

<mosaic_0001>
module attributes {stable_mosaic.version = 11 : i64} {
  func.func @point_transformer_kernel(%arg0: i32, %arg1: memref<128x36xbf16, #tpu.memory_space<vmem>>, %arg2: memref<8x128xi32, #tpu.memory_space<vmem>>, %arg3: memref<36x384xbf16, #tpu.memory_space<vmem>>, %arg4: memref<128x256xbf16, #tpu.memory_space<vmem>>, %arg5: memref<128x128xbf16, #tpu.memory_space<vmem>>, %arg6: memref<4x128xf32, #tpu.memory_space<vmem>>, %arg7: memref<8x128xf32, #tpu.memory_space<vmem>>) attributes {dimension_semantics = [#tpu.dimension_semantics<parallel>], iteration_bounds = array<i64: 1>, scalar_prefetch = 0 : i64, scratch_operands = 0 : i64, tpu.core_type = #tpu.core_type<tc>, window_params = [{transform_indices = @transform_0, window_bounds = array<i64: 128, 36>}, {transform_indices = @transform_1, window_bounds = array<i64: 8, 128>}, {pipeline_mode = #tpu.pipeline_mode<synchronous>, transform_indices = @transform_2, window_bounds = array<i64: 36, 384>}, {pipeline_mode = #tpu.pipeline_mode<synchronous>, transform_indices = @transform_3, window_bounds = array<i64: 128, 256>}, {pipeline_mode = #tpu.pipeline_mode<synchronous>, transform_indices = @transform_4, window_bounds = array<i64: 128, 128>}, {pipeline_mode = #tpu.pipeline_mode<synchronous>, transform_indices = @transform_5, window_bounds = array<i64: 4, 128>}, {transform_indices = @transform_6, window_bounds = array<i64: 8, 128>}]} {
    %c0 = arith.constant 0 : index
    %c0_0 = arith.constant 0 : index
    %0 = vector.load %arg1[%c0, %c0_0] : memref<128x36xbf16, #tpu.memory_space<vmem>>, vector<128x36xbf16>
    %c0_1 = arith.constant 0 : index
    %c0_2 = arith.constant 0 : index
    %1 = vector.load %arg3[%c0_1, %c0_2] : memref<36x384xbf16, #tpu.memory_space<vmem>>, vector<36x384xbf16>
    %cst = arith.constant dense<0.000000e+00> : vector<128x384xf32>
    %2 = tpu.matmul %0, %1, %cst {dimension_numbers = #tpu.dot_dimension_numbers<[1], [0], [0], [1], [0, 0, 1, 1], [], []>} : vector<128x36xbf16>, vector<36x384xbf16>, vector<128x384xf32> -> vector<128x384xf32>
    %3 = vector.extract_strided_slice %2 {offsets = [0, 0], sizes = [128, 128], strides = [1, 1]} : vector<128x384xf32> to vector<128x128xf32>
    %4 = vector.extract_strided_slice %2 {offsets = [0, 128], sizes = [128, 128], strides = [1, 1]} : vector<128x384xf32> to vector<128x128xf32>
    %5 = vector.extract_strided_slice %2 {offsets = [0, 256], sizes = [128, 128], strides = [1, 1]} : vector<128x384xf32> to vector<128x128xf32>
    %c0_3 = arith.constant 0 : index
    %c0_4 = arith.constant 0 : index
    %6 = vector.load %arg6[%c0_3, %c0_4] : memref<4x128xf32, #tpu.memory_space<vmem>>, vector<1x128xf32>
    %c1 = arith.constant 1 : index
    %c0_5 = arith.constant 0 : index
    %7 = vector.load %arg6[%c1, %c0_5] : memref<4x128xf32, #tpu.memory_space<vmem>>, vector<1x128xf32>
    %c2 = arith.constant 2 : index
    %c0_6 = arith.constant 0 : index
    %8 = vector.load %arg6[%c2, %c0_6] : memref<4x128xf32, #tpu.memory_space<vmem>>, vector<1x128xf32>
    %c3 = arith.constant 3 : index
    %c0_7 = arith.constant 0 : index
    %9 = vector.load %arg6[%c3, %c0_7] : memref<4x128xf32, #tpu.memory_space<vmem>>, vector<1x128xf32>
    %10 = vector.broadcast %6 : vector<1x128xf32> to vector<128x128xf32>
    %11 = arith.addf %3, %10 : vector<128x128xf32>
    %cst_8 = arith.constant 0.000000e+00 : f32
    %12 = vector.broadcast %cst_8 : f32 to vector<128x128xf32>
    %13 = arith.maximumf %11, %12 : vector<128x128xf32>
    %14 = arith.truncf %13 : vector<128x128xf32> to vector<128x128xbf16>
    %c0_9 = arith.constant 0 : index
    %c0_10 = arith.constant 0 : index
    %15 = vector.load %arg4[%c0_9, %c0_10] : memref<128x256xbf16, #tpu.memory_space<vmem>>, vector<128x256xbf16>
    %cst_11 = arith.constant dense<0.000000e+00> : vector<128x256xf32>
    %16 = tpu.matmul %14, %15, %cst_11 {dimension_numbers = #tpu.dot_dimension_numbers<[1], [0], [0], [1], [0, 0, 1, 1], [], []>} : vector<128x128xbf16>, vector<128x256xbf16>, vector<128x256xf32> -> vector<128x256xf32>
    %17 = vector.extract_strided_slice %16 {offsets = [0, 0], sizes = [128, 128], strides = [1, 1]} : vector<128x256xf32> to vector<128x128xf32>
    %18 = vector.broadcast %7 : vector<1x128xf32> to vector<128x128xf32>
    %19 = arith.addf %17, %18 : vector<128x128xf32>
    %20 = vector.extract_strided_slice %16 {offsets = [0, 128], sizes = [128, 128], strides = [1, 1]} : vector<128x256xf32> to vector<128x128xf32>
    %21 = arith.addf %5, %20 : vector<128x128xf32>
    %22 = vector.broadcast %8 : vector<1x128xf32> to vector<128x128xf32>
    %23 = arith.addf %21, %22 : vector<128x128xf32>
    %cst_12 = arith.constant 0.000000e+00 : f32
    %24 = vector.broadcast %cst_12 : f32 to vector<128x128xf32>
    %25 = arith.maximumf %23, %24 : vector<128x128xf32>
    %26 = arith.truncf %25 : vector<128x128xf32> to vector<128x128xbf16>
    %c0_13 = arith.constant 0 : index
    %c0_14 = arith.constant 0 : index
    %27 = vector.load %arg5[%c0_13, %c0_14] : memref<128x128xbf16, #tpu.memory_space<vmem>>, vector<128x128xbf16>
    %cst_15 = arith.constant dense<0.000000e+00> : vector<128x128xf32>
    %28 = tpu.matmul %26, %27, %cst_15 {dimension_numbers = #tpu.dot_dimension_numbers<[1], [0], [0], [1], [0, 0, 1, 1], [], []>} : vector<128x128xbf16>, vector<128x128xbf16>, vector<128x128xf32> -> vector<128x128xf32>
    %29 = vector.broadcast %9 : vector<1x128xf32> to vector<128x128xf32>
    %30 = arith.addf %28, %29 : vector<128x128xf32>
    %31 = arith.addf %4, %19 : vector<128x128xf32>
    %32 = vector.shape_cast %30 : vector<128x128xf32> to vector<8x16x128xf32>
    %33 = vector.shape_cast %31 : vector<128x128xf32> to vector<8x16x128xf32>
    %34 = tpu.iota {dimensions = array<i32: 1>} : vector<8x16x128xi32>
    %c0_16 = arith.constant 0 : index
    %c0_17 = arith.constant 0 : index
    %35 = vector.load %arg2[%c0_16, %c0_17] : memref<8x128xi32, #tpu.memory_space<vmem>>, vector<8x128xi32>
    %36 = vector.shape_cast %35 : vector<8x128xi32> to vector<8x1x128xi32>
    %37 = vector.broadcast %36 : vector<8x1x128xi32> to vector<8x16x128xi32>
    %38 = arith.cmpi slt, %34, %37 : vector<8x16x128xi32>
    %cst_18 = arith.constant 0.000000e+00 : f32
    %cst_19 = arith.constant -1.000000e+30 : f32
    %39 = vector.broadcast %cst_18 : f32 to vector<8x16x128xf32>
    %40 = vector.broadcast %cst_19 : f32 to vector<8x16x128xf32>
    %41 = arith.select %38, %39, %40 : vector<8x16x128xi1>, vector<8x16x128xf32>
    %42 = arith.addf %32, %41 : vector<8x16x128xf32>
    %cst_20 = arith.constant dense<0xFF800000> : vector<8x128xf32>
    %43 = vector.multi_reduction <maximumf>, %42, %cst_20 [1] : vector<8x16x128xf32> to vector<8x128xf32>
    %44 = vector.shape_cast %43 : vector<8x128xf32> to vector<8x1x128xf32>
    %45 = vector.broadcast %44 : vector<8x1x128xf32> to vector<8x16x128xf32>
    %46 = arith.subf %42, %45 : vector<8x16x128xf32>
    %47 = math.exp %46 : vector<8x16x128xf32>
    %cst_21 = arith.constant dense<0.000000e+00> : vector<8x128xf32>
    %48 = vector.multi_reduction <add>, %47, %cst_21 [1] : vector<8x16x128xf32> to vector<8x128xf32>
    %49 = vector.shape_cast %48 : vector<8x128xf32> to vector<8x1x128xf32>
    %cst_22 = arith.constant 1.000000e-16 : f32
    %50 = vector.broadcast %cst_22 : f32 to vector<8x1x128xf32>
    %51 = arith.addf %49, %50 : vector<8x1x128xf32>
    %52 = tpu.reciprocal %51 {approx = true} : vector<8x1x128xf32> -> vector<8x1x128xf32>
    %53 = vector.broadcast %52 : vector<8x1x128xf32> to vector<8x16x128xf32>
    %54 = arith.mulf %47, %53 : vector<8x16x128xf32>
    %55 = arith.mulf %54, %33 : vector<8x16x128xf32>
    %cst_23 = arith.constant dense<0.000000e+00> : vector<8x128xf32>
    %56 = vector.multi_reduction <add>, %55, %cst_23 [1] : vector<8x16x128xf32> to vector<8x128xf32>
    %c0_24 = arith.constant 0 : index
    %c0_25 = arith.constant 0 : index
    %57 = vector.load %arg7[%c0_24, %c0_25] : memref<8x128xf32, #tpu.memory_space<vmem>>, vector<8x128xf32>
    tpu.vector_store %arg7[%c0_24, %c0_25], %56 {strides = array<i32>} : memref<8x128xf32, #tpu.memory_space<vmem>>, vector<8x128xf32>,
    return
  }
  func.func @transform_0(%arg0: i32) -> (i32, i32) {
    %c0_i32 = arith.constant 0 : i32
    %c0_i32_0 = arith.constant 0 : i32
    return %arg0, %c0_i32 : i32, i32
  }
  func.func @transform_1(%arg0: i32) -> (i32, i32) {
    %c0_i32 = arith.constant 0 : i32
    %c0_i32_0 = arith.constant 0 : i32
    return %arg0, %c0_i32 : i32, i32
  }
  func.func @transform_2(%arg0: i32) -> (i32, i32) {
    %c0_i32 = arith.constant 0 : i32
    %c0_i32_0 = arith.constant 0 : i32
    %c0_i32_1 = arith.constant 0 : i32
    return %c0_i32, %c0_i32_0 : i32, i32
  }
  func.func @transform_3(%arg0: i32) -> (i32, i32) {
    %c0_i32 = arith.constant 0 : i32
    %c0_i32_0 = arith.constant 0 : i32
    %c0_i32_1 = arith.constant 0 : i32
    return %c0_i32, %c0_i32_0 : i32, i32
  }
  func.func @transform_4(%arg0: i32) -> (i32, i32) {
    %c0_i32 = arith.constant 0 : i32
    %c0_i32_0 = arith.constant 0 : i32
    %c0_i32_1 = arith.constant 0 : i32
    return %c0_i32, %c0_i32_0 : i32, i32
  }
  func.func @transform_5(%arg0: i32) -> (i32, i32) {
    %c0_i32 = arith.constant 0 : i32
    %c0_i32_0 = arith.constant 0 : i32
    %c0_i32_1 = arith.constant 0 : i32
    return %c0_i32, %c0_i32_0 : i32, i32
  }
  func.func @transform_6(%arg0: i32) -> (i32, i32) {
    %c0_i32 = arith.constant 0 : i32
    %c0_i32_0 = arith.constant 0 : i32
    return %arg0, %c0_i32 : i32, i32
  }
}

</mosaic_0001>

<bundles_post_ra>
// kernel: tpu_custom_call.1
= control target key start
LH: loop header
LB: loop body
LE: loop exit
PB: predicated region body
PF: predicated region fallthrough
CT: control target
= control target key end

     0   :  { %11 = vsyncpa [#allocation3], 0  ;;  %s2195_s0 = inlined_call_operand.vmem [shape: bf16[128,36], index: 0, kind: input, shape index: {}]   ;;  %s2196_s1 = inlined_call_operand.vmem [shape: s32[8,128], index: 1, kind: input, shape index: {}]   ;;  %s2197_s2 = inlined_call_operand.hbm [shape: bf16[36,384], index: 2, kind: input, shape index: {}]   ;;  %s2198_s3 = inlined_call_operand.hbm [shape: bf16[128,256], index: 3, kind: input, shape index: {}]   ;;  %s2199_s4 = inlined_call_operand.vmem [shape: bf16[128,128], index: 4, kind: input, shape index: {}]   ;;  %s2200_s5 = inlined_call_operand.vmem [shape: f32[4,128], index: 5, kind: input, shape index: {}]   ;;  %s2201_s6 = inlined_call_operand.hbm [shape: f32[8,128], index: 6, kind: output, shape index: {}]  }
   0x1   :  { %12 = vsyncpa [#allocation6], 0 }
   0x2   :  { %13 = vsyncpa [#allocation4], 0  ;;  %s1679_s21 = smov [#allocation2]  }
   0x3   :  { %s23_s22 = sshll.u32 %s1679_s21, 4  ;;  %s24_s22 = int_to_ptr.vmem [resolvable:$true] %s23_s22 }
   0x4   :  { %s1621_s23 = scalar_lea.vmem %s24_s22, 960  ;;  %p1626_p1 = scmp.lt.s32.totalorder %s24_s22, %s24_s22 }
   0x5   :  { %p1622_p0 = scmp.ne.s32.totalorder %s24_s22, %s1621_s23  ;;  %p1627_p2 = scmp.lt.s32.totalorder %s1621_s23, %s1621_s23 }
   0x7   :  { %p1628_p3 = por %p1627_p2, %p1626_p1 }
   0x9   :  { %p1629_p4 = pnand %p1628_p3, %p1622_p0 }
   0xb   :  { %1632 = shalt.err (!%p1629_p4)
}
   0xc   :  { %s1680_s24 = smov 192   ;;  %s1681_s25 = smov 12  }
   0xd   :  { %29 = dma.hbm_to_vmem [thread:$0]  %s2197_s2, 960, %s24_s22, [#allocation3], %s1680_s24, %s1680_s24, %s1681_s25  }
   0xe   :  { %s1682_s28 = smov [#allocation5]  }
   0xf   :  { %s35_s29 = sshll.u32 %s1682_s28, 4  ;;  %s36_s29 = int_to_ptr.vmem [resolvable:$true] %s35_s29 }
  0x10   :  { %s1641_s30 = scalar_lea.vmem %s36_s29, 2048  ;;  %p1646_p6 = scmp.lt.s32.totalorder %s36_s29, %s36_s29 }
  0x11   :  { %p1642_p5 = scmp.ne.s32.totalorder %s36_s29, %s1641_s30  ;;  %p1647_p7 = scmp.lt.s32.totalorder %s1641_s30, %s1641_s30 }
  0x13   :  { %p1648_p8 = por %p1647_p7, %p1646_p6 }
  0x15   :  { %p1649_p9 = pnand %p1648_p8, %p1642_p5 }
  0x17   :  { %1652 = shalt.err (!%p1649_p9)
}
  0x18   :  { %s1683_s7 = smov 128   ;;  %s1684_s8 = smov 8  }
  0x19   :  { %41 = dma.hbm_to_vmem [thread:$0]  %s2198_s3, 2048, %s36_s29, [#allocation6], %s1683_s7, %s1683_s7, %s1684_s8  }
  0x1a   :  { %1673 = dma.done.wait [#allocation3], 960  }
  0x1b   :  { %1674 = vsyncadd [#allocation3], 4294966336 }
  0x1c   :  { %1675 = dma.done.wait [#allocation6], 2048  }
  0x1d   :  { %1676 = vsyncadd [#allocation6], 4294965248  ;;  %v1685_v0 = vmov 0   ;;  %v77_v1 = vld [vmem:[#allocation2 + $0x30] sm:$0x33]  ;;  %vm184_vm0 = vcmask 1041408  }
  0x1e   :  { %226 = vmatprep.mubr.bf16.mxu0 %v1685_v0  ;;  %v1374_v2 = vcombine.high %v77_v1, %v77_v1  ;;  %v1373_v3 = vcombine.low %v77_v1, %v77_v1  ;;  %v1515_v4 = vld [vmem:[#allocation2 + $0x1c] ss:$12 sps:$4 sm:$0xff]   ;;  %vm159_vm1 = vcmask 293888   ;;  %v1521_v6 = vld [vmem:[%s2195_s0] sm:$0xff]   ;;  %v1534_v15 = vld [vmem:[#allocation5 + $0x74] ss:$8 sps:$4 sm:$0xff]  }
  0x1f   :  { %v1517_v7 = vld [vmem:[#allocation2 + $0x18] ss:$12 sps:$4 sm:$0xff]   ;;  %1454 = vmatprep.mubr.msk.bf16.mxu1 %vm159_vm1, %v1521_v6  ;;  %v1520_v9 = vld [vmem:[#allocation2] ss:$12 sps:$4 sm:$0xff]   ;;  %v1531_v13 = vld [vmem:[#allocation2 + $0x8] ss:$12 sps:$4 sm:$0xff]  }
  0x20   :  { %1376 = vmatprep.subr.msk.bf16.mxu0 %vm184_vm0, %v1374_v2  ;;  %v186_v5 = vsel %vm184_vm0, %v1373_v3, 0  ;;  %v1518_v8 = vld [vmem:[#allocation2 + $0x4] ss:$12 sps:$4 sm:$0xff]   ;;  %v1529_v10 = vld [vmem:[#allocation2 + $0x38] ss:$0 sps:$4 sm:$0x33]  }
  0x21   :  { %205 = vmatpush1.bf16.msra.mxu0 %v186_v5  ;;  %v1530_v11 = vld [vmem:[#allocation2 + $0x20] ss:$12 sps:$4 sm:$0xff]   ;;  %1502 = vmatprep.subr.msk.bf16.mxu1 %vm184_vm0, %v1529_v10  ;;  %v192_v12 = vsel %vm184_vm0, %v1529_v10, 0  ;;  %v1523_v18 = vld [vmem:[%s2195_s0 + $0x10] sm:$0xff]   ;;  %v1535_v19 = vld [vmem:[#allocation5 + $0x60] ss:$8 sps:$4 sm:$0xff]  }
  0x22   :  { %206 = vmatprep.subr.bf16.mxu0 %v1515_v4  ;;  %1449 = vmatpush3.bf16.msra.mxu1 %v192_v12  ;;  %v1522_v14 = vld [vmem:[%s2195_s0 + $0x8] sm:$0xff]   ;;  %v1540_v20 = vld [vmem:[#allocation5 + $0x54] ss:$8 sps:$4 sm:$0xff]   ;;  %v1525_v24 = vld [vmem:[%s2195_s0 + $0x20] sm:$0xff]  }
  0x23   :  { %1450 = vmatprep.subr.bf16.mxu1 %v1530_v11  ;;  %v1532_v16 = vld [vmem:[#allocation5 + $0x70] ss:$8 sps:$4 sm:$0xff]   ;;  %v1537_v17 = vld [vmem:[#allocation5 + $0x64] ss:$8 sps:$4 sm:$0xff]   ;;  %v1524_v22 = vld [vmem:[%s2195_s0 + $0x18] sm:$0xff]  }
  0x24   :  { %v1538_v21 = vld [vmem:[#allocation5 + $0x50] ss:$8 sps:$4 sm:$0xff]   ;;  %v1543_v23 = vld [vmem:[#allocation5 + $0x44] ss:$8 sps:$4 sm:$0xff]   ;;  %v1541_v25 = vld [vmem:[#allocation5 + $0x40] ss:$8 sps:$4 sm:$0xff]  }
  0x25   :  { %207 = vmatpush1.bf16.msra.mxu0 %v1517_v7  ;;  %v1546_v26 = vld [vmem:[#allocation5 + $0x34] ss:$8 sps:$4 sm:$0xff]   ;;  %v1544_v27 = vld [vmem:[#allocation5 + $0x30] ss:$8 sps:$4 sm:$0xff]   ;;  %v1549_v29 = vld [vmem:[#allocation5 + $0x24] ss:$8 sps:$4 sm:$0xff]  }
  0x26   :  { %208 = vmatprep.subr.bf16.mxu0 %v1518_v8  ;;  %1451 = vmatpush3.bf16.msra.mxu1 %v1530_v11  ;;  %v1526_v28 = vld [vmem:[%s2195_s0 + $0x28] sm:$0xff]   ;;  %v1527_v30 = vld [vmem:[%s2195_s0 + $0x30] sm:$0xff]   ;;  %v1547_v31 = vld [vmem:[#allocation5 + $0x20] ss:$8 sps:$4 sm:$0xff]  }
  0x27   :  { %1452 = vmatprep.subr.bf16.mxu1 %v1531_v13  ;;  %v1528_v32 = vld [vmem:[%s2195_s0 + $0x38] sm:$0xff]   ;;  %v1550_v34 = vld [vmem:[#allocation5 + $0x10] ss:$8 sps:$4 sm:$0xff]   ;;  %v1555_v35 = vld [vmem:[#allocation5 + $0x4] ss:$8 sps:$4 sm:$0xff]  }
  0x28   :  { %v1552_v33 = vld [vmem:[#allocation5 + $0x14] ss:$8 sps:$4 sm:$0xff]   ;;  %v1553_v36 = vld [vmem:[#allocation5] ss:$8 sps:$4 sm:$0xff]   ;;  %v1558_v39 = vld [vmem:[%s2199_s4 + $0x28] sm:$0xff]  }
  0x29   :  { %209 = vmatpush1.bf16.msra.mxu0 %v1520_v9  ;;  %v1556_v37 = vld [vmem:[%s2199_s4 + $0x38] sm:$0xff]   ;;  %v1557_v38 = vld [vmem:[%s2199_s4 + $0x30] sm:$0xff]   ;;  %v1795_v41 = vld [vmem:[%s2200_s5] ss:$0 sm:$0xff] }
  0x2a   :  { %1453 = vmatpush3.bf16.msra.mxu1 %v1531_v13  ;;  %1470 = vmatprep.subr.bf16.mxu0 %v1556_v37 }
  0x2b   :  { %548 = vmatprep.subr.bf16.mxu1 %v1534_v15 }
  0x2c   :  { %1377 = vmatmul.mubr.msk.bf16.vlgmr.msra.gmra.mxu0 %vm159_vm1, %v1521_v6 }
  0x2d   :  { %236 = vmatprep.mubr.bf16.mxu0 %v1685_v0  ;;  %1455 = vmatmul.mubr.msk.bf16.vlgmr.msra.gmra.mxu1 %vm159_vm1, %v1522_v14 }
  0x2e   :  { %549 = vmatpush1.bf16.msra.mxu1 %v1532_v16  ;;  %1458 = vmatprep.mubr.msk.bf16.mxu1 %vm159_vm1, %v1523_v18 }
  0x2f   :  { %550 = vmatprep.subr.bf16.mxu1 %v1537_v17  ;;  %1471 = vmatpush3.bf16.msra.mxu0 %v1556_v37 }
  0x30   :  { %1472 = vmatprep.subr.bf16.mxu0 %v1557_v38 }
  0x32   :  { %551 = vmatpush1.bf16.msra.mxu1 %v1535_v19 }
  0x33   :  { %552 = vmatprep.subr.bf16.mxu1 %v1540_v20  ;;  %1473 = vmatpush3.bf16.msra.mxu0 %v1557_v38 }
  0x34   :  { %1378 = vmatmul.mubr.msk.bf16.gmra.mxu0 %vm159_vm1, %v1522_v14  ;;  %1474 = vmatprep.subr.bf16.mxu0 %v1558_v39 }
  0x35   :  { %246 = vmatprep.mubr.bf16.mxu0 %v1685_v0  ;;  %1459 = vmatmul.mubr.msk.bf16.gmra.mxu1 %vm159_vm1, %v1524_v22 }
  0x36   :  { %553 = vmatpush1.bf16.msra.mxu1 %v1538_v21  ;;  %1462 = vmatprep.mubr.msk.bf16.mxu1 %vm159_vm1, %v1525_v24 }
  0x37   :  { %554 = vmatprep.subr.bf16.mxu1 %v1543_v23  ;;  %1475 = vmatpush3.bf16.msra.mxu0 %v1558_v39 }
  0x3a   :  { %555 = vmatpush1.bf16.msra.mxu1 %v1541_v25 }
  0x3b   :  { %556 = vmatprep.subr.bf16.mxu1 %v1546_v26 }
  0x3c   :  { %1379 = vmatmul.mubr.msk.bf16.gmra.mxu0 %vm159_vm1, %v1523_v18 }
  0x3d   :  { %256 = vmatprep.mubr.bf16.mxu0 %v1685_v0  ;;  %1463 = vmatmul.mubr.msk.bf16.gmra.mxu1 %vm159_vm1, %v1526_v28 }
  0x3e   :  { %557 = vmatpush1.bf16.msra.mxu1 %v1544_v27  ;;  %1466 = vmatprep.mubr.msk.bf16.mxu1 %vm159_vm1, %v1527_v30 }
  0x3f   :  { %558 = vmatprep.subr.bf16.mxu1 %v1549_v29 }
  0x42   :  { %559 = vmatpush1.bf16.msra.mxu1 %v1547_v31 }
  0x43   :  { %560 = vmatprep.subr.bf16.mxu1 %v1552_v33 }
  0x44   :  { %1380 = vmatmul.mubr.msk.bf16.gmra.mxu0 %vm159_vm1, %v1524_v22 }
  0x45   :  { %266 = vmatprep.mubr.bf16.mxu0 %v1685_v0  ;;  %1467 = vmatmul.mubr.msk.bf16.gmra.mxu1 %vm159_vm1, %v1528_v32 }
  0x46   :  { %580 = vmatprep.mubr.bf16.mxu1 %v1685_v0  ;;  %561 = vmatpush1.bf16.msra.mxu1 %v1550_v34 }
  0x47   :  { %562 = vmatprep.subr.bf16.mxu1 %v1555_v35 }
  0x4a   :  { %563 = vmatpush1.bf16.msra.mxu1 %v1553_v36 }
  0x4c   :  { %1381 = vmatmul.mubr.msk.bf16.gmra.mxu0 %vm159_vm1, %v1525_v24 }
  0x4d   :  { %276 = vmatprep.mubr.bf16.mxu0 %v1685_v0 }
  0x54   :  { %1382 = vmatmul.mubr.msk.bf16.gmra.mxu0 %vm159_vm1, %v1526_v28 }
  0x55   :  { %286 = vmatprep.mubr.bf16.mxu0 %v1685_v0 }
  0x5c   :  { %1383 = vmatmul.mubr.msk.bf16.gmra.mxu0 %vm159_vm1, %v1527_v30 }
  0x5d   :  { %296 = vmatprep.mubr.bf16.mxu0 %v1685_v0 }
  0x64   :  { %1384 = vmatmul.mubr.msk.bf16.gmra.mxu0 %vm159_vm1, %v1528_v32 }
  0xec   :  { %v228_v40 = vpop.f32.mrf.mxu0 }
  0xed   :  { %v412_v43 = vadd.f32 %v1795_v41, %v228_v40 }
  0xee   :  { %v1797_v42 = vpop.f32.mrf.mxu0 }
  0xef   :  { %v428_v47 = vmax.f32 %v412_v43, 0.0 }
  0xf0   :  { %v232_v44 = vpop.f32.mrf.mxu0 }
  0xf1   :  { %v413_v45 = vadd.f32 %v1795_v41, %v232_v44 }
  0xf2   :  { %v1801_v46 = vpop.f32.mrf.mxu0 }
  0xf3   :  { %v429_v48 = vmax.f32 %v413_v45, 0.0 }
  0xf4   :  { %v238_v49 = vpop.f32.mrf.mxu0 }
  0xf5   :  { %v444_v50 = vpack.c.bf16 %v429_v48, %v428_v47  ;;  %v414_v52 = vadd.f32 %v1795_v41, %v238_v49 }
  0xf6   :  { %v1803_v51 = vpop.f32.mrf.mxu0 }
  0xf7   :  { %581 = vmatmul.mubr.bf16.vlgmr.msra.gmra.mxu1 %v444_v50  ;;  %v430_v56 = vmax.f32 %v414_v52, 0.0 }
  0xf8   :  { %v242_v53 = vpop.f32.mrf.mxu0  ;;  %590 = vmatprep.mubr.bf16.mxu1 %v1685_v0 }
  0xf9   :  { %v415_v54 = vadd.f32 %v1795_v41, %v242_v53  ;;  %v1559_v53 = vld [vmem:[%s2199_s4 + $0x20] sm:$0xff]  }
  0xfa   :  { %v1808_v55 = vpop.f32.mrf.mxu0  ;;  %1476 = vmatprep.subr.bf16.mxu0 %v1559_v53 }
  0xfb   :  { %v431_v57 = vmax.f32 %v415_v54, 0.0  ;;  %1477 = vmatpush3.bf16.msra.mxu0 %v1559_v53  ;;  %v1560_v54 = vld [vmem:[%s2199_s4 + $0x18] sm:$0xff]  }
  0xfc   :  { %v248_v58 = vpop.f32.mrf.mxu0  ;;  %1478 = vmatprep.subr.bf16.mxu0 %v1560_v54 }
  0xfd   :  { %v445_v59 = vpack.c.bf16 %v431_v57, %v430_v56  ;;  %v416_v61 = vadd.f32 %v1795_v41, %v248_v58  ;;  %v1563_v56 = vld [vmem:[%s2199_s4] sm:$0xff]   ;;  %v1456_v57 = vpop.f32.mrf.mxu1 }
  0xfe   :  { %v1810_v60 = vpop.f32.mrf.mxu0 }
  0xff   :  { %591 = vmatmul.mubr.bf16.gmra.mxu1 %v445_v59  ;;  %v432_v2 = vmax.f32 %v416_v61, 0.0  ;;  %1479 = vmatpush3.bf16.msra.mxu0 %v1560_v54  ;;  %v341_v58 = vpop.f32.mrf.mxu1 }
 0x100   :  { %v252_v62 = vpop.f32.mrf.mxu0  ;;  %600 = vmatprep.mubr.bf16.mxu1 %v1685_v0 }
 0x101   :  { %v417_v63 = vadd.f32 %v1795_v41, %v252_v62  ;;  %v1457_v59 = vpop.f32.mrf.mxu1 }
 0x102   :  { %v1815_v1 = vpop.f32.mrf.mxu0 }
 0x103   :  { %v433_v3 = vmax.f32 %v417_v63, 0.0  ;;  %v344_v61 = vpop.f32.mrf.mxu1 }
 0x104   :  { %v258_v4 = vpop.f32.mrf.mxu0 }
 0x105   :  { %v446_v5 = vpack.c.bf16 %v433_v3, %v432_v2  ;;  %v418_v7 = vadd.f32 %v1795_v41, %v258_v4  ;;  %v1460_v62 = vpop.f32.mrf.mxu1 }
 0x106   :  { %v1817_v6 = vpop.f32.mrf.mxu0 }
 0x107   :  { %601 = vmatmul.mubr.bf16.gmra.mxu1 %v446_v5  ;;  %v434_v11 = vmax.f32 %v418_v7, 0.0  ;;  %v357_v63 = vpop.f32.mrf.mxu1 }
 0x108   :  { %v262_v8 = vpop.f32.mrf.mxu0  ;;  %610 = vmatprep.mubr.bf16.mxu1 %v1685_v0 }
 0x109   :  { %v419_v9 = vadd.f32 %v1795_v41, %v262_v8  ;;  %v1461_v2 = vpop.f32.mrf.mxu1 }
 0x10a   :  { %v1822_v10 = vpop.f32.mrf.mxu0 }
 0x10b   :  { %v435_v12 = vmax.f32 %v419_v9, 0.0  ;;  %v360_v3 = vpop.f32.mrf.mxu1 }
 0x10c   :  { %v268_v13 = vpop.f32.mrf.mxu0 }
 0x10d   :  { %v447_v14 = vpack.c.bf16 %v435_v12, %v434_v11  ;;  %v420_v16 = vadd.f32 %v1795_v41, %v268_v13  ;;  %v1865_v4 = vpop.f32.mrf.mxu1 }
 0x10e   :  { %v1824_v15 = vpop.f32.mrf.mxu0 }
 0x10f   :  { %611 = vmatmul.mubr.bf16.gmra.mxu1 %v447_v14  ;;  %v436_v20 = vmax.f32 %v420_v16, 0.0  ;;  %v373_v5 = vpop.f32.mrf.mxu1 }
 0x110   :  { %v272_v17 = vpop.f32.mrf.mxu0  ;;  %620 = vmatprep.mubr.bf16.mxu1 %v1685_v0 }
 0x111   :  { %v421_v18 = vadd.f32 %v1795_v41, %v272_v17  ;;  %v1867_v7 = vpop.f32.mrf.mxu1 }
 0x112   :  { %v1829_v19 = vpop.f32.mrf.mxu0 }
 0x113   :  { %v437_v21 = vmax.f32 %v421_v18, 0.0  ;;  %v376_v8 = vpop.f32.mrf.mxu1  ;;  %v1882_v18 = vld [vmem:[%s2200_s5 + $0x2] ss:$0 sm:$0xff] }
 0x114   :  { %v278_v22 = vpop.f32.mrf.mxu0 }
 0x115   :  { %v448_v23 = vpack.c.bf16 %v437_v21, %v436_v20  ;;  %v422_v25 = vadd.f32 %v1795_v41, %v278_v22  ;;  %v1869_v9 = vpop.f32.mrf.mxu1 }
 0x116   :  { %v1831_v24 = vpop.f32.mrf.mxu0 }
 0x117   :  { %621 = vmatmul.mubr.bf16.gmra.mxu1 %v448_v23  ;;  %v438_v29 = vmax.f32 %v422_v25, 0.0  ;;  %v1871_v11 = vpop.f32.mrf.mxu1 }
 0x118   :  { %v282_v26 = vpop.f32.mrf.mxu0  ;;  %630 = vmatprep.mubr.bf16.mxu1 %v1685_v0 }
 0x119   :  { %v423_v27 = vadd.f32 %v1795_v41, %v282_v26  ;;  %v1873_v12 = vpop.f32.mrf.mxu1 }
 0x11a   :  { %v1836_v28 = vpop.f32.mrf.mxu0 }
 0x11b   :  { %v439_v30 = vmax.f32 %v423_v27, 0.0  ;;  %v1875_v13 = vpop.f32.mrf.mxu1 }
 0x11c   :  { %v288_v31 = vpop.f32.mrf.mxu0 }
 0x11d   :  { %v449_v32 = vpack.c.bf16 %v439_v30, %v438_v29  ;;  %v424_v34 = vadd.f32 %v1795_v41, %v288_v31 }
 0x11e   :  { %v1838_v33 = vpop.f32.mrf.mxu0 }
 0x11f   :  { %2204 = vst [vmem:[#allocation11_spill] sm:$0xff] %v1838_v33  ;;  %631 = vmatmul.mubr.bf16.gmra.mxu1 %v449_v32  ;;  %v440_v38 = vmax.f32 %v424_v34, 0.0 }
 0x120   :  { %v292_v35 = vpop.f32.mrf.mxu0  ;;  %640 = vmatprep.mubr.bf16.mxu1 %v1685_v0 }
 0x121   :  { %v425_v36 = vadd.f32 %v1795_v41, %v292_v35 }
 0x122   :  { %v1843_v37 = vpop.f32.mrf.mxu0 }
 0x123   :  { %2205 = vst [vmem:[#allocation12_spill] sm:$0xff] %v1843_v37  ;;  %v441_v39 = vmax.f32 %v425_v36, 0.0 }
 0x124   :  { %v298_v40 = vpop.f32.mrf.mxu0 }
 0x125   :  { %v450_v43 = vpack.c.bf16 %v441_v39, %v440_v38  ;;  %v426_v45 = vadd.f32 %v1795_v41, %v298_v40 }
 0x126   :  { %v1845_v44 = vpop.f32.mrf.mxu0 }
 0x127   :  { %2206 = vst [vmem:[#allocation13_spill] sm:$0xff] %v1845_v44  ;;  %641 = vmatmul.mubr.bf16.gmra.mxu1 %v450_v43  ;;  %v442_v49 = vmax.f32 %v426_v45, 0.0 }
 0x128   :  { %v302_v47 = vpop.f32.mrf.mxu0  ;;  %650 = vmatprep.mubr.bf16.mxu1 %v1685_v0  ;;  %v1561_v0 = vld [vmem:[%s2199_s4 + $0x10] sm:$0xff]  }
 0x129   :  { %v427_v48 = vadd.f32 %v1795_v41, %v302_v47  ;;  %1480 = vmatprep.subr.bf16.mxu0 %v1561_v0  ;;  %v1562_v41 = vld [vmem:[%s2199_s4 + $0x8] sm:$0xff]  }
 0x12a   :  { %1481 = vmatpush3.bf16.msra.mxu0 %v1561_v0 }
 0x12b   :  { %v443_v50 = vmax.f32 %v427_v48, 0.0  ;;  %1482 = vmatprep.subr.bf16.mxu0 %v1562_v41 }
 0x12d   :  { %v451_v52 = vpack.c.bf16 %v443_v50, %v442_v49 }
 0x12e   :  { %1483 = vmatpush3.bf16.msra.mxu0 %v1562_v41 }
 0x12f   :  { %651 = vmatmul.mubr.bf16.gmra.mxu1 %v451_v52  ;;  %1484 = vmatprep.subr.bf16.mxu0 %v1563_v56 }
 0x132   :  { %1485 = vmatpush3.bf16.msra.mxu0 %v1563_v56 }
 0x1b7   :  { %v1877_v14 = vpop.f32.mrf.mxu1 }
 0x1b9   :  { %v584_v16 = vpop.f32.mrf.mxu1 }
 0x1ba   :  { %v681_v17 = vadd.f32 %v584_v16, %v341_v58 }
 0x1bb   :  { %v1884_v20 = vpop.f32.mrf.mxu1 }
 0x1bc   :  { %v701_v22 = vadd.f32 %v1882_v18, %v681_v17 }
 0x1bd   :  { %v588_v21 = vpop.f32.mrf.mxu1 }
 0x1be   :  { %v682_v23 = vadd.f32 %v588_v21, %v344_v61  ;;  %v717_v29 = vmax.f32 %v701_v22, 0.0 }
 0x1bf   :  { %v1887_v25 = vpop.f32.mrf.mxu1 }
 0x1c0   :  { %v702_v26 = vadd.f32 %v1882_v18, %v682_v23 }
 0x1c1   :  { %v594_v27 = vpop.f32.mrf.mxu1 }
 0x1c2   :  { %v718_v30 = vmax.f32 %v702_v26, 0.0  ;;  %v683_v31 = vadd.f32 %v1456_v57, %v594_v27 }
 0x1c3   :  { %v1890_v32 = vpop.f32.mrf.mxu1 }
 0x1c4   :  { %v733_v34 = vpack.c.bf16 %v718_v30, %v717_v29  ;;  %v703_v36 = vadd.f32 %v1882_v18, %v683_v31 }
 0x1c5   :  { %v598_v35 = vpop.f32.mrf.mxu1 }
 0x1c6   :  { %v684_v38 = vadd.f32 %v1457_v59, %v598_v35  ;;  %1486 = vmatprep.mubr.bf16.mxu0 %v733_v34  ;;  %v719_v45 = vmax.f32 %v703_v36, 0.0 }
 0x1c7   :  { %v1893_v39 = vpop.f32.mrf.mxu1 }
 0x1c8   :  { %v704_v40 = vadd.f32 %v1882_v18, %v684_v38 }
 0x1c9   :  { %v604_v43 = vpop.f32.mrf.mxu1 }
 0x1ca   :  { %v720_v47 = vmax.f32 %v704_v40, 0.0  ;;  %v685_v48 = vadd.f32 %v604_v43, %v357_v63 }
 0x1cb   :  { %v1896_v49 = vpop.f32.mrf.mxu1 }
 0x1cc   :  { %v734_v50 = vpack.c.bf16 %v720_v47, %v719_v45  ;;  %v705_v53 = vadd.f32 %v1882_v18, %v685_v48 }
 0x1cd   :  { %v608_v52 = vpop.f32.mrf.mxu1 }
 0x1ce   :  { %v686_v54 = vadd.f32 %v608_v52, %v360_v3  ;;  %1487 = vmatmul.mubr.bf16.vlgmr.msra.gmra.mxu0 %v734_v50  ;;  %v721_v57 = vmax.f32 %v705_v53, 0.0 }
 0x1cf   :  { %v1899_v0 = vpop.f32.mrf.mxu1 }
 0x1d0   :  { %v706_v41 = vadd.f32 %v1882_v18, %v686_v54 }
 0x1d1   :  { %v614_v56 = vpop.f32.mrf.mxu1 }
 0x1d2   :  { %v722_v58 = vmax.f32 %v706_v41, 0.0  ;;  %v687_v59 = vadd.f32 %v1460_v62, %v614_v56 }
 0x1d3   :  { %v1902_v61 = vpop.f32.mrf.mxu1 }
 0x1d4   :  { %v735_v16 = vpack.c.bf16 %v722_v58, %v721_v57  ;;  %v707_v17 = vadd.f32 %v1882_v18, %v687_v59 }
 0x1d5   :  { %v618_v63 = vpop.f32.mrf.mxu1 }
 0x1d6   :  { %v688_v21 = vadd.f32 %v1461_v2, %v618_v63  ;;  %1490 = vmatprep.mubr.bf16.mxu0 %v735_v16  ;;  %v723_v26 = vmax.f32 %v707_v17, 0.0 }
 0x1d7   :  { %v1905_v22 = vpop.f32.mrf.mxu1 }
 0x1d8   :  { %v708_v3 = vadd.f32 %v1882_v18, %v688_v21 }
 0x1d9   :  { %v624_v23 = vpop.f32.mrf.mxu1 }
 0x1da   :  { %v724_v27 = vmax.f32 %v708_v3, 0.0  ;;  %v689_v29 = vadd.f32 %v624_v23, %v373_v5 }
 0x1db   :  { %v1908_v30 = vpop.f32.mrf.mxu1 }
 0x1dc   :  { %v736_v31 = vpack.c.bf16 %v724_v27, %v723_v26  ;;  %v709_v34 = vadd.f32 %v1882_v18, %v689_v29 }
 0x1dd   :  { %v628_v62 = vpop.f32.mrf.mxu1 }
 0x1de   :  { %v690_v35 = vadd.f32 %v628_v62, %v376_v8  ;;  %1491 = vmatmul.mubr.bf16.gmra.mxu0 %v736_v31  ;;  %v725_v40 = vmax.f32 %v709_v34, 0.0 }
 0x1df   :  { %v1911_v36 = vpop.f32.mrf.mxu1 }
 0x1e0   :  { %v710_v2 = vadd.f32 %v1882_v18, %v690_v35 }
 0x1e1   :  { %v634_v38 = vpop.f32.mrf.mxu1 }
 0x1e2   :  { %v726_v43 = vmax.f32 %v710_v2, 0.0  ;;  %v691_v45 = vadd.f32 %v1865_v4, %v634_v38  ;;  %v922_v38 = vlaneseq }
 0x1e3   :  { %v1915_v47 = vpop.f32.mrf.mxu1 }
 0x1e4   :  { %v737_v5 = vpack.c.bf16 %v726_v43, %v725_v40  ;;  %v711_v50 = vadd.f32 %v1882_v18, %v691_v45  ;;  %v1686_v40 = vmov 1966171168   ;;  %v1936_v45 = vshrl.u32 %v922_v38, 7 }
 0x1e5   :  { %v638_v48 = vpop.f32.mrf.mxu1  ;;  %v928_v43 = vunpack.c.l.s4 %v1686_v40 }
 0x1e6   :  { %v692_v52 = vadd.f32 %v1867_v7, %v638_v48  ;;  %1494 = vmatprep.mubr.bf16.mxu0 %v737_v5  ;;  %v727_v41 = vmax.f32 %v711_v50, 0.0 }
 0x1e7   :  { %v1919_v8 = vpop.f32.mrf.mxu1 }
 0x1e8   :  { %2207 = vst [vmem:[#allocation14_spill] sm:$0xff] %v1919_v8  ;;  %v712_v53 = vadd.f32 %v1882_v18, %v692_v52  ;;  %v1947_v52 = vsub.s32 0, %v1936_v45 }
 0x1e9   :  { %v644_v54 = vpop.f32.mrf.mxu1 }
 0x1ea   :  { %v728_v56 = vmax.f32 %v712_v53, 0.0  ;;  %v693_v57 = vadd.f32 %v644_v54, %v1871_v11 }
 0x1eb   :  { %v1923_v58 = vpop.f32.mrf.mxu1 }
 0x1ec   :  { %2208 = vst [vmem:[#allocation15_spill] sm:$0xff] %v1923_v58  ;;  %v738_v4 = vpack.c.bf16 %v728_v56, %v727_v41  ;;  %v713_v16 = vadd.f32 %v1882_v18, %v693_v57  ;;  %v1952_v41 = vadd.s32 8, %v1936_v45  ;;  %v1954_v56 = vpop.f32.mrf.mxu0 }
 0x1ed   :  { %v648_v59 = vpop.f32.mrf.mxu1  ;;  %2209 = vst [vmem:[#allocation16_spill] sm:$0xff] %v1954_v56 }
 0x1ee   :  { %v694_v63 = vadd.f32 %v648_v59, %v1875_v13  ;;  %1495 = vmatmul.mubr.bf16.gmra.mxu0 %v738_v4  ;;  %v729_v3 = vmax.f32 %v713_v16, 0.0  ;;  %v1960_v59 = vld [vmem:[%s2200_s5 + $0x3] ss:$0 sm:$0xff] }
 0x1ef   :  { %v1927_v7 = vpop.f32.mrf.mxu1 }
 0x1f0   :  { %v714_v17 = vadd.f32 %v1882_v18, %v694_v63 }
 0x1f1   :  { %v654_v21 = vpop.f32.mrf.mxu1 }
 0x1f2   :  { %v730_v23 = vmax.f32 %v714_v17, 0.0  ;;  %v695_v26 = vadd.f32 %v1869_v9, %v654_v21  ;;  %v929_v9 = vunpack.c.0.s8 %v928_v43  ;;  %v2202_v17 = vmov -1e+30  }
 0x1f3   :  { %v1931_v27 = vpop.f32.mrf.mxu1 }
 0x1f4   :  { %v739_v11 = vpack.c.bf16 %v730_v23, %v729_v3  ;;  %v715_v31 = vadd.f32 %v1882_v18, %v695_v26  ;;  %v1939_v5 = vsub.s32 %v929_v9, %v1936_v45 }
 0x1f5   :  { %v658_v29 = vpop.f32.mrf.mxu1 }
 0x1f6   :  { %v696_v62 = vadd.f32 %v1873_v12, %v658_v29  ;;  %1498 = vmatprep.mubr.bf16.mxu0 %v739_v11  ;;  %v731_v34 = vmax.f32 %v715_v31, 0.0  ;;  %v925_v12 = vld [vmem:[%s2196_s1] sm:$0xff] }
 0x1f7   :  { %v933_v48 = vrot.slane %v925_v12, %v1939_v5 }
 0x1f8   :  { %v716_v13 = vadd.f32 %v1882_v18, %v696_v62 }
 0x1f9   :  { %v941_v18 = vcombine.high %v933_v48, %v933_v48  ;;  %v949_v53 = vrot.slane %v933_v48, %v1939_v5 }
 0x1fa   :  { %v732_v35 = vmax.f32 %v716_v13, 0.0 }
 0x1fb   :  { %v963_v50 = vrot.slane %v941_v18, %v1939_v5  ;;  %v978_v57 = vrot.slane %v949_v53, %v1947_v52  ;;  %v971_v18 = vcombine.high %v949_v53, %v949_v53 }
 0x1fc   :  { %v740_v2 = vpack.c.bf16 %v732_v35, %v731_v34 }
 0x1fd   :  { %v982_v54 = vrot.slane %v963_v50, %v1947_v52  ;;  %vm1007_vm4 = vcmp.lt.s32.totalorder %v1936_v45, %v978_v57  ;;  %vm1008_vm5 = vcmp.lt.s32.totalorder %v1952_v41, %v978_v57  ;;  %v973_v43 = vcombine.high %v963_v50, %v963_v50 }
 0x1fe   :  { %1499 = vmatmul.mubr.bf16.gmra.mxu0 %v740_v2  ;;  %v1023_v29 = vsel %vm1007_vm4, 0.0, %v2202_v17  ;;  %v1024_v62 = vsel %vm1008_vm5, 0.0, %v2202_v17  ;;  %vm1331_vm4 = vcmask 1043459   ;;  %vm1333_vm5 = vcmask 1044484  }
 0x1ff   :  { %vm1009_vm2 = vcmp.lt.s32.totalorder %v1936_v45, %v982_v54  ;;  %vm1010_vm3 = vcmp.lt.s32.totalorder %v1952_v41, %v982_v54  ;;  %v926_v54 = vcombine.high %v925_v12, %v925_v12 }
 0x200   :  { %v1025_v21 = vsel %vm1009_vm2, 0.0, %v2202_v17  ;;  %v1026_v23 = vsel %vm1010_vm3, 0.0, %v2202_v17  ;;  %v986_v17 = vrot.slane %v971_v18, %v1947_v52  ;;  %vm1327_vm2 = vcmask 1041409  }
 0x201   :  { %vm1329_vm3 = vcmask 1042434  }
 0x202   :  { %vm1011_vm8 = vcmp.lt.s32.totalorder %v1936_v45, %v986_v17  ;;  %vm1012_vm9 = vcmp.lt.s32.totalorder %v1952_v41, %v986_v17 }
 0x28e   :  { %v1488_v4 = vpop.f32.mrf.mxu0 }
 0x28f   :  { %v852_v63 = vadd.f32 %v1488_v4, %v1960_v59 }
 0x290   :  { %v843_v16 = vpop.f32.mrf.mxu0 }
 0x291   :  { %v844_v26 = vadd.f32 %v1960_v59, %v843_v16  ;;  %v1041_v13 = vadd.f32 %v1025_v21, %v852_v63  ;;  %v990_v16 = vrot.slane %v973_v43, %v1947_v52  ;;  %v940_v21 = vrot.slane %v926_v54, %v1939_v5 }
 0x292   :  { %v1489_v3 = vpop.f32.mrf.mxu0 }
 0x293   :  { %v855_v11 = vadd.f32 %v1489_v3, %v1960_v59  ;;  %v1039_v2 = vadd.f32 %v1023_v29, %v844_v26  ;;  %vm1014_vm6 = vcmp.lt.s32.totalorder %v1952_v41, %v990_v16  ;;  %vm1013_vm7 = vcmp.lt.s32.totalorder %v1936_v45, %v990_v16 }
 0x294   :  { %v846_v31 = vpop.f32.mrf.mxu0 }
 0x295   :  { %v1042_v34 = vadd.f32 %v1026_v23, %v855_v11  ;;  %v847_v35 = vadd.f32 %v1960_v59, %v846_v31  ;;  %v2210_v31 = vmov -1e+30  }
 0x297   :  { %v1062_v38 = vmax.f32 %v1041_v13, %v1042_v34  ;;  %v1040_v40 = vadd.f32 %v1024_v62, %v847_v35  ;;  %v1030_v62 = vsel %vm1014_vm6, 0.0, %v2210_v31  ;;  %v942_v35 = vcombine.high %v940_v21, %v940_v21 }
 0x298   :  { %vm1335_vm6 = vcmask 1045509  }
 0x299   :  { %v1063_v9 = vrot.slane %v1062_v38, 4  ;;  %v1055_v48 = vmax.f32 %v1039_v2, %v1040_v40 }
 0x29b   :  { %v1064_v57 = vmax.f32 %v1062_v38, %v1063_v9  ;;  %v1056_v4 = vrot.slane %v1055_v48, 4  ;;  %v1029_v9 = vsel %vm1013_vm7, 0.0, %v2210_v31  ;;  %vm1337_vm7 = vcmask 1046534  }
 0x29d   :  { %v1065_v3 = vrot.slane %v1064_v57, 2  ;;  %v1057_v37 = vmax.f32 %v1055_v48, %v1056_v4 }
 0x29e   :  { %v1492_v63 = vpop.f32.mrf.mxu0 }
 0x29f   :  { %v1066_v23 = vmax.f32 %v1064_v57, %v1065_v3  ;;  %v1058_v26 = vrot.slane %v1057_v37, 2  ;;  %v868_v11 = vadd.f32 %v1492_v63, %v1960_v59  ;;  %v1028_v57 = vsel %vm1012_vm9, 0.0, %v2210_v31 }
 0x2a0   :  { %v859_v50 = vpop.f32.mrf.mxu0 }
 0x2a1   :  { %v1067_v53 = vrot.slane %v1066_v23, 1  ;;  %v1059_v12 = vmax.f32 %v1057_v37, %v1058_v26  ;;  %v860_v18 = vadd.f32 %v1960_v59, %v859_v50  ;;  %v1027_v37 = vsel %vm1011_vm8, 0.0, %v2210_v31 }
 0x2a2   :  { %v1493_v29 = vpop.f32.mrf.mxu0  ;;  %v1045_v63 = vadd.f32 %v1029_v9, %v868_v11  ;;  %v1992_v26 = vrot.slane %v942_v35, %v1939_v5  ;;  %vm1339_vm8 = vcmask 1047559  }
 0x2a3   :  { %v1068_v38 = vmax.f32 %v1066_v23, %v1067_v53  ;;  %v1060_v43 = vrot.slane %v1059_v12, 1  ;;  %v871_v48 = vadd.f32 %v1493_v29, %v1960_v59  ;;  %v1994_v56 = vadd.f32 %v1027_v37, %v860_v18 }
 0x2a4   :  { %v862_v54 = vpop.f32.mrf.mxu0 }
 0x2a5   :  { %v1113_v17 = vsub.f32 %v1041_v13, %v1068_v38  ;;  %v1114_v4 = vsub.f32 %v1042_v34, %v1068_v38  ;;  %v1061_v16 = vmax.f32 %v1059_v12, %v1060_v43  ;;  %v1988_v3 = vadd.f32 %v1030_v62, %v871_v48 }
 0x2a6   :  { %v863_v23 = vadd.f32 %v1960_v59, %v862_v54  ;;  %v2000_v12 = vrot.slane %v940_v21, %v1939_v5 }
 0x2a7   :  { %v1131_v53 = vmul.f32 1.442695, %v1113_v17  ;;  %v1133_v29 = vmul.f32 1.442695, %v1114_v4  ;;  %v1111_v33 = vsub.f32 %v1039_v2, %v1061_v16  ;;  %v1112_v50 = vsub.f32 %v1040_v40, %v1061_v16 }
 0x2a8   :  { %v1076_v44 = vmax.f32 %v1045_v63, %v1988_v3  ;;  %v1997_v58 = vadd.f32 %v1028_v57, %v863_v23  ;;  %v998_v2 = vrot.slane %v1992_v26, %v1947_v52  ;;  %v994_v38 = vrot.slane %v2000_v12, %v1947_v52 }
 0x2a9   :  { %1565 = vpow2.f32 %v1131_v53  ;;  %v1127_v13 = vmul.f32 1.442695, %v1111_v33  ;;  %v1129_v34 = vmul.f32 1.442695, %v1112_v50 }
 0x2aa   :  { %1567 = vpow2.f32 %v1133_v29  ;;  %v1077_v11 = vrot.slane %v1076_v44, 4  ;;  %v1069_v62 = vmax.f32 %v1994_v56, %v1997_v58  ;;  %vm1017_vm10 = vcmp.lt.s32.totalorder %v1936_v45, %v998_v2 }
 0x2ab   :  { %1569 = vpow2.f32 %v1127_v13  ;;  %vm1018_vm11 = vcmp.lt.s32.totalorder %v1952_v41, %v998_v2  ;;  %vm1015_vm12 = vcmp.lt.s32.totalorder %v1936_v45, %v994_v38  ;;  %vm1016_vm13 = vcmp.lt.s32.totalorder %v1952_v41, %v994_v38 }
 0x2ac   :  { %1571 = vpow2.f32 %v1129_v34  ;;  %v1078_v40 = vmax.f32 %v1076_v44, %v1077_v11  ;;  %v1070_v35 = vrot.slane %v1069_v62, 4  ;;  %v1033_v54 = vsel %vm1017_vm10, 0.0, %v2210_v31 }
 0x2ad   :  { %v1034_v17 = vsel %vm1018_vm11, 0.0, %v2210_v31  ;;  %v1031_v29 = vsel %vm1015_vm12, 0.0, %v2210_v31  ;;  %v1032_v13 = vsel %vm1016_vm13, 0.0, %v2210_v31  ;;  %v974_v2 = vcombine.high %v1992_v26, %v1992_v26 }
 0x2ae   :  { %v1079_v33 = vrot.slane %v1078_v40, 2  ;;  %v1071_v43 = vmax.f32 %v1069_v62, %v1070_v35  ;;  %v1496_v9 = vpop.f32.mrf.mxu0 }
 0x2af   :  { %v884_v18 = vadd.f32 %v1496_v9, %v1960_v59 }
 0x2b0   :  { %v1080_v5 = vmax.f32 %v1078_v40, %v1079_v33  ;;  %v1072_v21 = vrot.slane %v1071_v43, 2  ;;  %v875_v48 = vpop.f32.mrf.mxu0 }
 0x2b1   :  { %v876_v4 = vadd.f32 %v1960_v59, %v875_v48  ;;  %v2019_v34 = vadd.f32 %v1033_v54, %v884_v18  ;;  %v972_v48 = vcombine.high %v2000_v12, %v2000_v12 }
 0x2b2   :  { %v1081_v44 = vrot.slane %v1080_v5, 1  ;;  %v1073_v37 = vmax.f32 %v1071_v43, %v1072_v21  ;;  %v1497_v57 = vpop.f32.mrf.mxu0 }
 0x2b3   :  { %v887_v16 = vadd.f32 %v1497_v57, %v1960_v59  ;;  %v2031_v9 = vadd.f32 %v1031_v29, %v876_v4  ;;  %v1006_v4 = vrot.slane %v974_v2, %v1947_v52 }
 0x2b4   :  { %v1082_v23 = vmax.f32 %v1080_v5, %v1081_v44  ;;  %v1074_v53 = vrot.slane %v1073_v37, 1  ;;  %v878_v50 = vpop.f32.mrf.mxu0 }
 0x2b5   :  { %v2021_v11 = vadd.f32 %v1034_v17, %v887_v16  ;;  %v879_v62 = vadd.f32 %v1960_v59, %v878_v50  ;;  %vm1021_vm14 = vcmp.lt.s32.totalorder %v1936_v45, %v1006_v4  ;;  %vm1022_vm15 = vcmp.lt.s32.totalorder %v1952_v41, %v1006_v4 }
 0x2b6   :  { %v2026_v40 = vpop.eup %1565  ;;  %v1117_v35 = vsub.f32 %v1045_v63, %v1082_v23  ;;  %v1118_v38 = vsub.f32 %v1988_v3, %v1082_v23  ;;  %v1075_v33 = vmax.f32 %v1073_v37, %v1074_v53  ;;  %v1038_v4 = vsel %vm1022_vm15, 0.0, %v2210_v31 }
 0x2b7   :  { %v2029_v43 = vpop.eup %1567  ;;  %v1090_v5 = vmax.f32 %v2019_v34, %v2021_v11  ;;  %v2035_v21 = vadd.f32 %v1032_v13, %v879_v62 }
 0x2b8   :  { %v2039_v18 = vpop.eup %1569  ;;  %v1166_v63 = vadd.f32 %v2029_v43, %v2026_v40  ;;  %v1139_v26 = vmul.f32 1.442695, %v1117_v35  ;;  %v1141_v3 = vmul.f32 1.442695, %v1118_v38  ;;  %v1115_v44 = vsub.f32 %v1994_v56, %v1075_v33 }
 0x2b9   :  { %v2044_v37 = vpop.eup %1571  ;;  %v1116_v54 = vsub.f32 %v1997_v58, %v1075_v33  ;;  %v1091_v57 = vrot.slane %v1090_v5, 4  ;;  %v1083_v17 = vmax.f32 %v2031_v9, %v2035_v21  ;;  %v1002_v58 = vrot.slane %v972_v48, %v1947_v52 }
 0x2ba   :  { %v1167_v12 = vrot.slane %v1166_v63, 4  ;;  %v1159_v16 = vadd.f32 %v2044_v37, %v2039_v18  ;;  %1573 = vpow2.f32 %v1139_v26  ;;  %v1135_v23 = vmul.f32 1.442695, %v1115_v44 }
 0x2bb   :  { %1575 = vpow2.f32 %v1141_v3  ;;  %v1137_v53 = vmul.f32 1.442695, %v1116_v54  ;;  %v1092_v29 = vmax.f32 %v1090_v5, %v1091_v57  ;;  %v1084_v56 = vrot.slane %v1083_v17, 4 }
 0x2bc   :  { %v1168_v50 = vadd.f32 %v1167_v12, %v1166_v63  ;;  %v1160_v13 = vrot.slane %v1159_v16, 4  ;;  %1577 = vpow2.f32 %v1135_v23  ;;  %vm1019_vm0 = vcmp.lt.s32.totalorder %v1936_v45, %v1002_v58 }
 0x2bd   :  { %1579 = vpow2.f32 %v1137_v53  ;;  %v1093_v62 = vrot.slane %v1092_v29, 2  ;;  %v1085_v35 = vmax.f32 %v1083_v17, %v1084_v56  ;;  %v1037_v54 = vsel %vm1021_vm14, 0.0, %v2210_v31 }
 0x2be   :  { %v1169_v38 = vrot.slane %v1168_v50, 2  ;;  %v1161_v2 = vadd.f32 %v1160_v13, %v1159_v16  ;;  %v1500_v33 = vpop.f32.mrf.mxu0  ;;  %vm1020_vm1 = vcmp.lt.s32.totalorder %v1952_v41, %v1002_v58 }
 0x2bf   :  { %v1094_v8 = vmax.f32 %v1092_v29, %v1093_v62  ;;  %v1086_v26 = vrot.slane %v1085_v35, 2  ;;  %v900_v63 = vadd.f32 %v1500_v33, %v1960_v59  ;;  %v1035_v29 = vsel %vm1019_vm0, 0.0, %v2210_v31 }
 0x2c0   :  { %v1170_v3 = vadd.f32 %v1169_v38, %v1168_v50  ;;  %v1162_v5 = vrot.slane %v1161_v2, 2  ;;  %v891_v44 = vpop.f32.mrf.mxu0  ;;  %v1036_v41 = vsel %vm1020_vm1, 0.0, %v2210_v31 }
 0x2c1   :  { %v1095_v52 = vrot.slane %v1094_v8, 1  ;;  %v1087_v48 = vmax.f32 %v1085_v35, %v1086_v26  ;;  %v892_v12 = vadd.f32 %v1960_v59, %v891_v44  ;;  %v2063_v13 = vadd.f32 %v1037_v54, %v900_v63 }
 0x2c2   :  { %v1171_v57 = vrot.slane %v1170_v3, 1  ;;  %v1163_v17 = vadd.f32 %v1162_v5, %v1161_v2  ;;  %v1501_v16 = vpop.f32.mrf.mxu0 }
 0x2c3   :  { %v1096_v23 = vmax.f32 %v1094_v8, %v1095_v52  ;;  %v1088_v53 = vrot.slane %v1087_v48, 1  ;;  %v903_v56 = vadd.f32 %v1501_v16, %v1960_v59  ;;  %v2070_v26 = vadd.f32 %v1035_v29, %v892_v12 }
 0x2c4   :  { %v1172_v45 = vadd.f32 %v1171_v57, %v1170_v3  ;;  %v1164_v50 = vrot.slane %v1163_v17, 1  ;;  %v894_v62 = vpop.f32.mrf.mxu0 }
 0x2c5   :  { %v1121_v58 = vsub.f32 %v2019_v34, %v1096_v23  ;;  %v1122_v35 = vsub.f32 %v2021_v11, %v1096_v23  ;;  %v1089_v38 = vmax.f32 %v1087_v48, %v1088_v53  ;;  %v2068_v2 = vadd.f32 %v1038_v4, %v903_v56  ;;  %v2096_v56 = vld [vmem:[%s2200_s5 + $0x1] ss:$0 sm:$0xff]  ;;  %s1688_s5 = smov [#allocation7]  }
 0x2c6   :  { %v1216_v8 = vadd.f32 1e-16, %v1172_v45  ;;  %v1165_v33 = vadd.f32 %v1164_v50, %v1163_v17  ;;  %v895_v5 = vadd.f32 %v1960_v59, %v894_v62  ;;  %s1349_s22 = sshll.u32 %s1688_s5, 4  ;;  %s1350_s22 = int_to_ptr.vmem [resolvable:$true] %s1349_s22 }
 0x2c7   :  { %v2073_v3 = vpop.eup %1573  ;;  %v1147_v63 = vmul.f32 1.442695, %v1121_v58  ;;  %v1149_v44 = vmul.f32 1.442695, %v1122_v35  ;;  %v1119_v52 = vsub.f32 %v2031_v9, %v1089_v38  ;;  %v1120_v31 = vsub.f32 %v2035_v21, %v1089_v38  ;;  %s1653_s23 = scalar_lea.vmem %s1350_s22, 128  ;;  %p1658_p11 = scmp.lt.s32.totalorder %s1350_s22, %s1350_s22 }
 0x2c8   :  { %v2077_v34 = vpop.eup %1575  ;;  %1581 = vrcp.f32 %v1216_v8  ;;  %v1215_v11 = vadd.f32 1e-16, %v1165_v33  ;;  %v1104_v48 = vmax.f32 %v2063_v13, %v2068_v2  ;;  %v2081_v54 = vadd.f32 %v1036_v41, %v895_v5  ;;  %p1654_p10 = scmp.ne.s32.totalorder %s1350_s22, %s1653_s23  ;;  %p1659_p12 = scmp.lt.s32.totalorder %s1653_s23, %s1653_s23 }
 0x2c9   :  { %v2083_v57 = vpop.eup %1577  ;;  %v1180_v59 = vadd.f32 %v2077_v34, %v2073_v3  ;;  %1583 = vpow2.f32 %v1147_v63  ;;  %v1143_v17 = vmul.f32 1.442695, %v1119_v52  ;;  %v1145_v12 = vmul.f32 1.442695, %v1120_v31 }
 0x2ca   :  { %v2087_v9 = vpop.eup %1579  ;;  %1585 = vrcp.f32 %v1215_v11  ;;  %v1105_v21 = vrot.slane %v1104_v48, 4  ;;  %v1097_v16 = vmax.f32 %v2070_v26, %v2081_v54  ;;  %v665_v38 = vadd.f32 %v2096_v56, %v1877_v14  ;;  %p1660_p13 = por %p1659_p12, %p1658_p11 }
 0x2cb   :  { %v1181_v4 = vrot.slane %v1180_v59, 4  ;;  %v1173_v23 = vadd.f32 %v2087_v9, %v2083_v57  ;;  %1587 = vpow2.f32 %v1149_v44  ;;  %v667_v5 = vadd.f32 %v2096_v56, %v1887_v25 }
 0x2cc   :  { %1589 = vpow2.f32 %v1143_v17  ;;  %v1106_v53 = vmax.f32 %v1104_v48, %v1105_v21  ;;  %v1098_v29 = vrot.slane %v1097_v16, 4  ;;  %v668_v63 = vadd.f32 %v2096_v56, %v1890_v32  ;;  %p1661_p0 = pnand %p1660_p13, %p1654_p10 }
 0x2cd   :  { %v1182_v45 = vadd.f32 %v1181_v4, %v1180_v59  ;;  %v1174_v50 = vrot.slane %v1173_v23, 4  ;;  %1591 = vpow2.f32 %v1145_v12  ;;  %v666_v48 = vadd.f32 %v2096_v56, %v1884_v20 }
 0x2ce   :  { %v1107_v62 = vrot.slane %v1106_v53, 2  ;;  %v1099_v41 = vmax.f32 %v1097_v16, %v1098_v29  ;;  %v906_v12 = vadd.f32 %v665_v38, %v1797_v42  ;;  %v908_v4 = vadd.f32 %v667_v5, %v1803_v51 }
 0x2cf   :  { %v1183_v58 = vrot.slane %v1182_v45, 2  ;;  %v1175_v35 = vadd.f32 %v1174_v50, %v1173_v23  ;;  %v909_v25 = vadd.f32 %v668_v63, %v1808_v55 }
 0x2d0   :  { %v1108_v8 = vmax.f32 %v1106_v53, %v1107_v62  ;;  %v1100_v33 = vrot.slane %v1099_v41, 2  ;;  %v907_v62 = vadd.f32 %v666_v48, %v1801_v46 }
 0x2d1   :  { %v1184_v44 = vadd.f32 %v1183_v58, %v1182_v45  ;;  %v1176_v52 = vrot.slane %v1175_v35, 2 }
 0x2d2   :  { %v1109_v31 = vrot.slane %v1108_v8, 1  ;;  %v1101_v11 = vmax.f32 %v1099_v41, %v1100_v33 }
 0x2d3   :  { %v1185_v59 = vrot.slane %v1184_v44, 1  ;;  %v1177_v17 = vadd.f32 %v1176_v52, %v1175_v35 }
 0x2d4   :  { %v1110_v14 = vmax.f32 %v1108_v8, %v1109_v31  ;;  %v1102_v21 = vrot.slane %v1101_v11, 1 }
 0x2d5   :  { %v1582_v16 = vpop.eup %1581  ;;  %v1186_v23 = vadd.f32 %v1185_v59, %v1184_v44  ;;  %v1178_v32 = vrot.slane %v1177_v17, 1 }
 0x2d6   :  { %v2109_v53 = vpop.eup %1583  ;;  %v1233_v29 = vmul.f32 %v1582_v16, %v2026_v40  ;;  %v1234_v45 = vmul.f32 %v1582_v16, %v2029_v43  ;;  %v1125_v20 = vsub.f32 %v2063_v13, %v1110_v14  ;;  %v1126_v50 = vsub.f32 %v2068_v2, %v1110_v14 }
 0x2d7   :  { %v1586_v42 = vpop.eup %1585  ;;  %v1218_v41 = vadd.f32 1e-16, %v1186_v23  ;;  %v1179_v58 = vadd.f32 %v1178_v32, %v1177_v17  ;;  %v1103_v51 = vmax.f32 %v1101_v11, %v1102_v21 }
 0x2d8   :  { %v2116_v35 = vpop.eup %1587  ;;  %v1249_v55 = vmul.f32 %v1233_v29, %v908_v4  ;;  %v1250_v38 = vmul.f32 %v1234_v45, %v909_v25  ;;  %v1231_v8 = vmul.f32 %v1586_v42, %v2039_v18  ;;  %v1232_v40 = vmul.f32 %v1586_v42, %v2044_v37 }
 0x2d9   :  { %v2120_v33 = vpop.eup %1589  ;;  %1593 = vrcp.f32 %v1218_v41  ;;  %v1217_v43 = vadd.f32 1e-16, %v1179_v58  ;;  %v1194_v13 = vadd.f32 %v2116_v35, %v2109_v53  ;;  %v1155_v2 = vmul.f32 1.442695, %v1125_v20 }
 0x2da   :  { %v2124_v46 = vpop.eup %1591  ;;  %v1270_v5 = vadd.f32 %v1250_v38, %v1249_v55  ;;  %v1247_v63 = vmul.f32 %v1231_v8, %v906_v12  ;;  %v1248_v44 = vmul.f32 %v1232_v40, %v907_v62  ;;  %v1157_v52 = vmul.f32 1.442695, %v1126_v50 }
 0x2db   :  { %1595 = vrcp.f32 %v1217_v43  ;;  %v1195_v31 = vrot.slane %v1194_v13, 4  ;;  %v1187_v18 = vadd.f32 %v2124_v46, %v2120_v33  ;;  %v1123_v37 = vsub.f32 %v2070_v26, %v1103_v51 }
 0x2dc   :  { %v1271_v11 = vrot.slane %v1270_v5, 4  ;;  %v1263_v48 = vadd.f32 %v1248_v44, %v1247_v63  ;;  %1597 = vpow2.f32 %v1155_v2  ;;  %v1124_v59 = vsub.f32 %v2081_v54, %v1103_v51 }
 0x2dd   :  { %v1196_v17 = vadd.f32 %v1195_v31, %v1194_v13  ;;  %v1188_v14 = vrot.slane %v1187_v18, 4  ;;  %1599 = vpow2.f32 %v1157_v52  ;;  %v1151_v21 = vmul.f32 1.442695, %v1123_v37 }
 0x2de   :  { %v1264_v16 = vrot.slane %v1263_v48, 4  ;;  %v1153_v12 = vmul.f32 1.442695, %v1124_v59  ;;  %v1272_v4 = vadd.f32 %v1271_v11, %v1270_v5  ;;  %v669_v20 = vadd.f32 %v2096_v56, %v1893_v39 }
 0x2df   :  { %v1197_v25 = vrot.slane %v1196_v17, 2  ;;  %v1189_v23 = vadd.f32 %v1188_v14, %v1187_v18  ;;  %1601 = vpow2.f32 %v1151_v21  ;;  %v672_v54 = vadd.f32 %v2096_v56, %v1902_v61 }
 0x2e0   :  { %1603 = vpow2.f32 %v1153_v12  ;;  %v1265_v32 = vadd.f32 %v1264_v16, %v1263_v48  ;;  %v1273_v29 = vrot.slane %v1272_v4, 2  ;;  %v670_v58 = vadd.f32 %v2096_v56, %v1896_v49 }
 0x2e1   :  { %v1198_v45 = vadd.f32 %v1197_v25, %v1196_v17  ;;  %v1190_v26 = vrot.slane %v1189_v23, 2  ;;  %v671_v51 = vadd.f32 %v2096_v56, %v1899_v0  ;;  %v910_v39 = vadd.f32 %v669_v20, %v1810_v60 }
 0x2e2   :  { %v1266_v50 = vrot.slane %v1265_v32, 2  ;;  %v1274_v42 = vadd.f32 %v1273_v29, %v1272_v4  ;;  %v913_v13 = vadd.f32 %v672_v54, %v1822_v10  ;;  %v911_v0 = vadd.f32 %v670_v58, %v1815_v1 }
 0x2e3   :  { %v1199_v62 = vrot.slane %v1198_v45, 1  ;;  %v1191_v41 = vadd.f32 %v1190_v26, %v1189_v23  ;;  %v912_v52 = vadd.f32 %v671_v51, %v1817_v6  ;;  %v675_v54 = vadd.f32 %v2096_v56, %v1911_v36 }
 0x2e4   :  { %v1267_v55 = vadd.f32 %v1266_v50, %v1265_v32  ;;  %v1275_v38 = vrot.slane %v1274_v42, 1  ;;  %v676_v50 = vadd.f32 %v2096_v56, %v1915_v47  ;;  %v674_v51 = vadd.f32 %v2096_v56, %v1908_v30 }
 0x2e5   :  { %v1200_v8 = vadd.f32 %v1199_v62, %v1198_v45  ;;  %v1192_v40 = vrot.slane %v1191_v41, 1  ;;  %v673_v45 = vadd.f32 %v2096_v56, %v1905_v22 }
 0x2e6   :  { %v1594_v43 = vpop.eup %1593  ;;  %v1268_v61 = vrot.slane %v1267_v55, 1  ;;  %v1276_v18 = vadd.f32 %v1275_v38, %v1274_v42  ;;  %v917_v36 = vadd.f32 %v676_v50, %v1836_v28  ;;  %v915_v30 = vadd.f32 %v674_v51, %v1829_v19  ;;  %v2214_v50 = vld [vmem:[#allocation16_spill] sm:$0xff] }
 0x2e7   :  { %v1237_v2 = vmul.f32 %v1594_v43, %v2073_v3  ;;  %v1238_v5 = vmul.f32 %v1594_v43, %v2077_v34  ;;  %v1220_v63 = vadd.f32 1e-16, %v1200_v8  ;;  %v1193_v49 = vadd.f32 %v1192_v40, %v1191_v41 }
 0x2e8   :  { %v1596_v44 = vpop.eup %1595  ;;  %v1269_v31 = vadd.f32 %v1268_v61, %v1267_v55  ;;  %v914_v8 = vadd.f32 %v673_v45, %v1824_v15 }
 0x2e9   :  { %v2144_v37 = vpop.eup %1597  ;;  %v1254_v60 = vmul.f32 %v1238_v5, %v913_v13  ;;  %v1235_v10 = vmul.f32 %v1596_v44, %v2083_v57  ;;  %v1236_v11 = vmul.f32 %v1596_v44, %v2087_v9  ;;  %1605 = vrcp.f32 %v1220_v63 }
 0x2ea   :  { %v2148_v3 = vpop.eup %1599  ;;  %v1219_v34 = vadd.f32 1e-16, %v1193_v49  ;;  %v1253_v48 = vmul.f32 %v1237_v2, %v912_v52  ;;  %v1328_v59 = vsel %vm1327_vm2, %v1276_v18, %v1269_v31 }
 0x2eb   :  { %v1251_v17 = vmul.f32 %v1235_v10, %v910_v39  ;;  %v1252_v1 = vmul.f32 %v1236_v11, %v911_v0  ;;  %v1208_v6 = vadd.f32 %v2148_v3, %v2144_v37  ;;  %v916_v39 = vadd.f32 %v675_v54, %v1831_v24 }
 0x2ec   :  { %v2153_v14 = vpop.eup %1601  ;;  %1607 = vrcp.f32 %v1219_v34  ;;  %v1284_v21 = vadd.f32 %v1254_v60, %v1253_v48 }
 0x2ed   :  { %v2155_v16 = vpop.eup %1603  ;;  %v1277_v57 = vadd.f32 %v1252_v1, %v1251_v17  ;;  %v1209_v9 = vrot.slane %v1208_v6, 4 }
 0x2ee   :  { %v1201_v12 = vadd.f32 %v2155_v16, %v2153_v14  ;;  %v1285_v4 = vrot.slane %v1284_v21, 4 }
 0x2ef   :  { %v1210_v25 = vadd.f32 %v1209_v9, %v1208_v6  ;;  %v1278_v23 = vrot.slane %v1277_v57, 4 }
 0x2f0   :  { %v1202_v32 = vrot.slane %v1201_v12, 4  ;;  %v1286_v29 = vadd.f32 %v1285_v4, %v1284_v21  ;;  %v2211_v4 = vld [vmem:[#allocation14_spill] sm:$0xff] }
 0x2f1   :  { %v1211_v26 = vrot.slane %v1210_v25, 2  ;;  %v1279_v20 = vadd.f32 %v1278_v23, %v1277_v57 }
 0x2f2   :  { %v1203_v42 = vadd.f32 %v1202_v32, %v1201_v12  ;;  %v1287_v62 = vrot.slane %v1286_v29, 2 }
 0x2f3   :  { %v1212_v41 = vadd.f32 %v1211_v26, %v1210_v25  ;;  %v1280_v58 = vrot.slane %v1279_v20, 2  ;;  %v677_v25 = vadd.f32 %v2096_v56, %v2211_v4  ;;  %v2213_v26 = vld [vmem:[#allocation13_spill] sm:$0xff] }
 0x2f4   :  { %v1204_v55 = vrot.slane %v1203_v42, 2  ;;  %v1288_v38 = vadd.f32 %v1287_v62, %v1286_v29  ;;  %v2212_v29 = vld [vmem:[#allocation15_spill] sm:$0xff] }
 0x2f5   :  { %v1213_v22 = vrot.slane %v1212_v41, 1  ;;  %v1281_v40 = vadd.f32 %v1280_v58, %v1279_v20  ;;  %v678_v45 = vadd.f32 %v2096_v56, %v2212_v29  ;;  %v2215_v58 = vld [vmem:[#allocation11_spill] sm:$0xff] }
 0x2f6   :  { %v1606_v43 = vpop.eup %1605  ;;  %v1205_v13 = vadd.f32 %v1204_v55, %v1203_v42  ;;  %v1289_v47 = vrot.slane %v1288_v38, 1  ;;  %v918_v51 = vadd.f32 %v677_v25, %v2215_v58 }
 0x2f7   :  { %v1242_v61 = vmul.f32 %v1606_v43, %v2116_v35  ;;  %v1214_v2 = vadd.f32 %v1213_v22, %v1212_v41  ;;  %v1241_v5 = vmul.f32 %v1606_v43, %v2109_v53  ;;  %v1282_v63 = vrot.slane %v1281_v40, 1  ;;  %v2216_v22 = vld [vmem:[#allocation12_spill] sm:$0xff] }
 0x2f8   :  { %v1206_v49 = vrot.slane %v1205_v13, 1  ;;  %v1290_v35 = vadd.f32 %v1289_v47, %v1288_v38 }
 0x2f9   :  { %v1608_v15 = vpop.eup %1607  ;;  %v1222_v44 = vadd.f32 1e-16, %v1214_v2  ;;  %v1257_v0 = vmul.f32 %v1241_v5, %v916_v39  ;;  %v1258_v52 = vmul.f32 %v1242_v61, %v917_v36  ;;  %v1283_v24 = vadd.f32 %v1282_v63, %v1281_v40 }
 0x2fa   :  { %v1239_v28 = vmul.f32 %v1608_v15, %v2120_v33  ;;  %v1240_v31 = vmul.f32 %v1608_v15, %v2124_v46  ;;  %v1207_v18 = vadd.f32 %v1206_v49, %v1205_v13  ;;  %v679_v46 = vadd.f32 %v2096_v56, %v1927_v7 }
 0x2fb   :  { %1609 = vrcp.f32 %v1222_v44  ;;  %v1298_v60 = vadd.f32 %v1258_v52, %v1257_v0  ;;  %v1330_v53 = vsel %vm1329_vm3, %v1283_v24, %v1328_v59  ;;  %v680_v59 = vadd.f32 %v2096_v56, %v1931_v27 }
 0x2fc   :  { %v1256_v10 = vmul.f32 %v1240_v31, %v915_v30  ;;  %v1221_v11 = vadd.f32 1e-16, %v1207_v18  ;;  %v1255_v19 = vmul.f32 %v1239_v28, %v914_v8  ;;  %v1332_v34 = vsel %vm1331_vm4, %v1290_v35, %v1330_v53 }
 0x2fd   :  { %v1299_v48 = vrot.slane %v1298_v60, 4  ;;  %v920_v20 = vadd.f32 %v679_v46, %v2213_v26  ;;  %v921_v42 = vadd.f32 %v680_v59, %v2214_v50  ;;  %v919_v56 = vadd.f32 %v678_v45, %v2216_v22 }
 0x2fe   :  { %1611 = vrcp.f32 %v1221_v11  ;;  %v1291_v17 = vadd.f32 %v1256_v10, %v1255_v19 }
 0x2ff   :  { %v1300_v1 = vadd.f32 %v1299_v48, %v1298_v60 }
 0x300   :  { %v1292_v6 = vrot.slane %v1291_v17, 4 }
 0x301   :  { %v1301_v21 = vrot.slane %v1300_v1, 2 }
 0x302   :  { %v1293_v57 = vadd.f32 %v1292_v6, %v1291_v17 }
 0x303   :  { %v1302_v33 = vadd.f32 %v1301_v21, %v1300_v1 }
 0x304   :  { %v1294_v9 = vrot.slane %v1293_v57, 2 }
 0x305   :  { %v1303_v23 = vrot.slane %v1302_v33, 1 }
 0x306   :  { %v1295_v12 = vadd.f32 %v1294_v9, %v1293_v57 }
 0x307   :  { %v1304_v8 = vadd.f32 %v1303_v23, %v1302_v33 }
 0x308   :  { %v1610_v32 = vpop.eup %1609  ;;  %v1296_v54 = vrot.slane %v1295_v12, 1 }
 0x309   :  { %v1245_v7 = vmul.f32 %v1610_v32, %v2144_v37  ;;  %v1246_v62 = vmul.f32 %v1610_v32, %v2148_v3 }
 0x30a   :  { %v1297_v27 = vadd.f32 %v1296_v54, %v1295_v12 }
 0x30b   :  { %v1612_v41 = vpop.eup %1611  ;;  %v1261_v55 = vmul.f32 %v1245_v7, %v920_v20  ;;  %v1262_v38 = vmul.f32 %v1246_v62, %v921_v42 }
 0x30c   :  { %v1243_v40 = vmul.f32 %v1612_v41, %v2153_v14  ;;  %v1244_v43 = vmul.f32 %v1612_v41, %v2155_v16  ;;  %v1334_v39 = vsel %vm1333_vm5, %v1297_v27, %v1332_v34 }
 0x30d   :  { %v1312_v36 = vadd.f32 %v1262_v38, %v1261_v55  ;;  %v1336_v37 = vsel %vm1335_vm6, %v1304_v8, %v1334_v39 }
 0x30e   :  { %v1259_v13 = vmul.f32 %v1243_v40, %v918_v51  ;;  %v1260_v3 = vmul.f32 %v1244_v43, %v919_v56 }
 0x30f   :  { %v1313_v47 = vrot.slane %v1312_v36, 4 }
 0x310   :  { %v1305_v61 = vadd.f32 %v1260_v3, %v1259_v13 }
 0x311   :  { %v1314_v2 = vadd.f32 %v1313_v47, %v1312_v36 }
 0x312   :  { %v1306_v5 = vrot.slane %v1305_v61, 4 }
 0x313   :  { %v1315_v63 = vrot.slane %v1314_v2, 2 }
 0x314   :  { %v1307_v30 = vadd.f32 %v1306_v5, %v1305_v61 }
 0x315   :  { %v1316_v49 = vadd.f32 %v1315_v63, %v1314_v2 }
 0x316   :  { %v1308_v15 = vrot.slane %v1307_v30, 2 }
 0x317   :  { %v1317_v0 = vrot.slane %v1316_v49, 1 }
 0x318   :  { %v1309_v44 = vadd.f32 %v1308_v15, %v1307_v30 }
 0x319   :  { %v1318_v16 = vadd.f32 %v1317_v0, %v1316_v49 }
 0x31a   :  { %v1310_v52 = vrot.slane %v1309_v44, 1 }
 0x31c   :  { %v1311_v14 = vadd.f32 %v1310_v52, %v1309_v44 }
 0x31e   :  { %v1338_v24 = vsel %vm1337_vm7, %v1311_v14, %v1336_v37 }
 0x31f   :  { %v1340_v28 = vsel %vm1339_vm8, %v1318_v16, %v1338_v24 }
 0x320   :  { %1342 = vst [vmem:[#allocation7] sm:$0xff] %v1340_v28 }
 0x321   :  { %1664 = shalt.err (!%p1661_p0)
}
 0x322   :  { %1352 = dma.vmem_to_hbm [thread:$0]  %s1350_s22, 128, %s2201_s6, [#allocation4]  }
 0x323   :  { %1677 = dma.done.wait [#allocation4], 128  }
 0x324   :  { %1678 = vsyncadd [#allocation4], 4294967168 }
 0x325   :  { %1356 = vsyncpa [#allocation3], 1 }
 0x326   :  { %1357 = vsyncpa [#allocation6], 1 }
 0x327   :  { %1358 = vsyncpa [#allocation4], 1 }

</bundles_post_ra>
